<compile_context>
chip_gen: v7x
topology: tpu7x:2x2x1
jax: 0.10.0
libtpu: 0.0.40
codegen_flags: <defaults>
</compile_context>

<pallas_src>
import math

import jax
import jax.numpy as jnp
import numpy as np
from jax import lax
from jax.experimental import pallas as pl
from jax.experimental.pallas import tpu as pltpu


# --------------------------------------------------------------------------- #
# Kernel
# --------------------------------------------------------------------------- #
def _penc3d_kernel(freq_ref, phase_ref, mask_ref, tab_yz_ref, o_ref):
    """Assembles one (TX, TY, ZCp) lane-dense slab of the 3-D positional encoding.

    Per-lane invariants (inv_freq, sin/cos phase, x-vs-yz mask) and the merged
    y/z table are precomputed in the wrapper and DMA'd in once; the only
    per-tile transcendental work left is the x-table sin(x*inv_freq + phase),
    which runs on the EUP slot and hides under the HBM store stream.  The store
    path is a single vselect between the x-table and the y/z table.
    """
    TX, TY, ZCp = o_ref.shape
    x0 = pl.program_id(0) * TX
    xi = (x0 + lax.broadcasted_iota(jnp.int32, (TX, 1, ZCp), 0)).astype(jnp.float32)
    # cos folded as sin(a + pi/2) via the per-lane phase vector.
    tab_x = jnp.sin(xi * freq_ref[...] + phase_ref[...])            # (TX, 1, ZCp)
    val = jnp.where(mask_ref[...] != 0, tab_x, tab_yz_ref[...])     # (TX, TY, ZCp)
    o_ref[...] = val.astype(o_ref.dtype)


# --------------------------------------------------------------------------- #
# Host-side helpers (tiny, O((Y+3)*Z*C) work)
# --------------------------------------------------------------------------- #
def _lane_tables(Y, Z, C, channels, ZCp):
    """Grid-invariant per-lane tables for the lane-dense (.., Z*C) slab."""
    ZC = Z * C
    lane = np.arange(ZC, dtype=np.int64)
    c = lane % C                          # original channel index
    z = lane // C                         # z position folded into the lane axis

    is_x = c < channels
    is_y = (c >= channels) & (c < 2 * channels)
    cs = np.where(is_x, c, np.where(is_y, c - channels, c - 2 * channels))
    k = cs // 2
    # inv_freq[k] = 10000 ** (-2k / channels)  -- matches the PyTorch buffer.
    inv_freq = (10000.0 ** (-(2.0 * k.astype(np.float64)) / channels)).astype(np.float32)
    # even interleave position -> sin, odd -> cos == sin(a + pi/2)  (x-table only)
    phase = (cs & 1).astype(np.float32) * np.float32(0.5 * np.pi)

    # Merged y/z table (exact sin/cos), shape (Y, ZC).  x-lanes get don't-care
    # values (overwritten by the in-kernel select).
    pos_yz = np.where(is_y[None, :],
                      np.arange(Y, dtype=np.float32)[:, None],
                      z[None, :].astype(np.float32))
    ang = pos_yz * inv_freq[None, :]
    tab_yz = np.where((cs & 1)[None, :] == 0, np.sin(ang), np.cos(ang)).astype(np.float32)

    def pad_lanes(a):
        if ZCp == ZC:
            return a
        pad = [(0, 0)] * (a.ndim - 1) + [(0, ZCp - ZC)]
        return np.pad(a, pad)

    freq = pad_lanes(inv_freq.reshape(1, 1, ZC))
    ph = pad_lanes(phase.reshape(1, 1, ZC))
    mask = pad_lanes(is_x.astype(np.int32).reshape(1, 1, ZC))
    tab_yz = pad_lanes(tab_yz.reshape(1, Y, ZC))
    return freq, ph, mask, tab_yz


def _device_kind():
    try:
        return jax.devices()[0].device_kind.lower()
    except Exception:
        return ""


def _vmem_budgets(kind):
    """(per-tile soft budget, vmem_limit_bytes) per TPU generation."""
    if ("7" in kind) or (not kind):
        # v7x: 64 MiB physical VMEM -> keep total well inside; unknown -> be safe.
        return 24 * 1024 * 1024, 32 * 1024 * 1024
    # v5e / v6e / v5p / v4: 128 MiB physical VMEM.
    return 48 * 1024 * 1024, 64 * 1024 * 1024


def _has_megacore(kind):
    """True for chips with 2 TensorCores per chip (v4 / v5p / v7x / unknown)."""
    if not kind:
        return True
    if "v5e" in kind or "v5 lite" in kind or "v6" in kind:
        return False
    return True


def _divisors_desc(n):
    return [d for d in range(n, 0, -1) if n % d == 0]


def _choose_tiles(X, Y, ZCp, elt, budget, want_multi_step):
    """Pick (tx, ty) so the kernel's VMEM footprint fits `budget`.

    Footprint counted: double-buffered output block + f32 assembly temp +
    x-table temp + double-buffered y/z-table block + lane vectors.
    On 2-TC chips we additionally require >= 2 (preferably an even number of)
    grid steps along X so megacore sharding engages.
    """
    def usage(tx, ty):
        out_blk = tx * ty * ZCp * elt
        val_tmp = tx * ty * ZCp * 4
        tabx_tmp = tx * ZCp * 4
        yz_blk = ty * ZCp * 4
        lane_vecs = 3 * ZCp * 4
        return 2 * out_blk + val_tmp + tabx_tmp + 2 * yz_blk + 2 * lane_vecs

    # Prefer the full Y extent; fall back to 8-aligned divisors of Y.
    y_cands = [Y] + [d for d in _divisors_desc(Y) if d != Y and d % 8 == 0]
    for ty in y_cands:
        x_fit = [d for d in _divisors_desc(X) if usage(d, ty) <= budget]
        if not x_fit:
            continue
        if want_multi_step and X >= 2:
            even = [d for d in x_fit if X // d >= 2 and (X // d) % 2 == 0]
            multi = [d for d in x_fit if X // d >= 2]
            if even:
                return even[0], ty
            if multi:
                return multi[0], ty
        return x_fit[0], ty
    # Last resort: smallest legal tile (vmem_limit_bytes still requested).
    small_ty = next((d for d in sorted(_divisors_desc(Y)) if d % 8 == 0), Y)
    return 1, small_ty


# --------------------------------------------------------------------------- #
# Public wrapper
# --------------------------------------------------------------------------- #
def positional_encoding_3d(tensor):
    """Pallas equivalent of PositionalEncoding3D.forward (no cross-call caching)."""
    if tensor.ndim != 5:
        raise RuntimeError("The input tensor has to be 5d!")
    B, X, Y, Z, C = tensor.shape

    channels = int(math.ceil(C / 6) * 2)
    if channels % 2:
        channels += 1

    ZC = Z * C
    ZCp = ((ZC + 127) // 128) * 128          # lane-dense (unmasked vst) slab width
    elt = jnp.dtype(tensor.dtype).itemsize

    kind = _device_kind()
    tile_budget, vmem_limit = _vmem_budgets(kind)
    tx, ty = _choose_tiles(X, Y, ZCp, elt, tile_budget, _has_megacore(kind))
    gx, gy = X // tx, Y // ty

    freq, phase, mask, tab_yz = _lane_tables(Y, Z, C, channels, ZCp)

    grid_spec = pltpu.PrefetchScalarGridSpec(
        num_scalar_prefetch=0,
        grid=(gx, gy),
        in_specs=[
            pl.BlockSpec((1, 1, ZCp), lambda i, j: (0, 0, 0)),    # inv_freq lanes
            pl.BlockSpec((1, 1, ZCp), lambda i, j: (0, 0, 0)),    # sin/cos phase
            pl.BlockSpec((1, 1, ZCp), lambda i, j: (0, 0, 0)),    # x-lane mask
            pl.BlockSpec((1, ty, ZCp), lambda i, j: (0, j, 0)),   # merged y/z table
        ],
        out_specs=pl.BlockSpec((tx, ty, ZCp), lambda i, j: (i, j, 0)),
    )

    enc = pl.pallas_call(
        _penc3d_kernel,
        out_shape=jax.ShapeDtypeStruct((X, Y, ZCp), tensor.dtype),
        grid_spec=grid_spec,
        compiler_params=pltpu.CompilerParams(
            dimension_semantics=("parallel", "parallel"),
            vmem_limit_bytes=vmem_limit,
        ),
    )(
        jnp.asarray(freq),
        jnp.asarray(phase),
        jnp.asarray(mask),
        jnp.asarray(tab_yz),
    )

    if ZCp != ZC:
        enc = enc[..., :ZC]
    enc = enc.reshape(X, Y, Z, C)
    # TODO(synk): a fused "x + penc(x)" variant would avoid materializing B
    # identical copies; the module's forward returns only the encoding, so we
    # keep the broadcast here.
    return jnp.broadcast_to(enc[None], (B, X, Y, Z, C))


# --------------------------------------------------------------------------- #
# Pure-JAX reference (port of the PyTorch forward) for correctness checking
# --------------------------------------------------------------------------- #
def _reference_penc3d(tensor):
    B, X, Y, Z, C = tensor.shape
    channels = int(math.ceil(C / 6) * 2)
    if channels % 2:
        channels += 1
    inv_freq = 1.0 / (
        10000.0 ** (jnp.arange(0, channels, 2, dtype=jnp.float32) / channels)
    )

    def get_emb(sin_inp):
        emb = jnp.stack([jnp.sin(sin_inp), jnp.cos(sin_inp)], axis=-1)
        return emb.reshape(sin_inp.shape[0], -1)

    sin_x = jnp.arange(X, dtype=jnp.float32)[:, None] * inv_freq[None, :]
    sin_y = jnp.arange(Y, dtype=jnp.float32)[:, None] * inv_freq[None, :]
    sin_z = jnp.arange(Z, dtype=jnp.float32)[:, None] * inv_freq[None, :]
    emb_x = get_emb(sin_x)[:, None, None, :]
    emb_y = get_emb(sin_y)[None, :, None, :]
    emb_z = get_emb(sin_z)[None, None, :, :]

    emb = jnp.zeros((X, Y, Z, 3 * channels), dtype=jnp.float32)
    emb = emb.at[..., :channels].set(jnp.broadcast_to(emb_x, (X, Y, Z, channels)))
    emb = emb.at[..., channels:2 * channels].set(
        jnp.broadcast_to(emb_y, (X, Y, Z, channels)))
    emb = emb.at[..., 2 * channels:].set(
        jnp.broadcast_to(emb_z, (X, Y, Z, channels)))
    return jnp.broadcast_to(emb[None, ..., :C], (B, X, Y, Z, C)).astype(tensor.dtype)


if __name__ == "__main__":
    key = jax.random.PRNGKey(0)
    # (batch, x, y, z, ch) — channels-last as the module expects.
    x = jax.random.normal(key, (2, 16, 16, 8, 32), dtype=jnp.float32)

    out = jax.block_until_ready(positional_encoding_3d(x))
    ref = jax.block_until_ready(_reference_penc3d(x))

    assert out.shape == x.shape and out.dtype == x.dtype
    np.testing.assert_allclose(np.asarray(out), np.asarray(ref), atol=2e-3, rtol=2e-3)

    print("KERNEL_OK")
</pallas_src>

<mosaic_0001>
module attributes {stable_mosaic.version = 11 : i64} {
  func.func @_penc3d_kernel(%arg0: i32, %arg1: i32, %arg2: memref<1x1x256xf32, #tpu.memory_space<vmem>>, %arg3: memref<1x1x256xf32, #tpu.memory_space<vmem>>, %arg4: memref<1x1x256xi32, #tpu.memory_space<vmem>>, %arg5: memref<1x16x256xf32, #tpu.memory_space<vmem>>, %arg6: memref<8x16x256xf32, #tpu.memory_space<vmem>>) attributes {dimension_semantics = [#tpu.dimension_semantics<parallel>, #tpu.dimension_semantics<parallel>], iteration_bounds = array<i64: 2, 1>, scalar_prefetch = 0 : i64, scratch_operands = 0 : i64, tpu.core_type = #tpu.core_type<tc>, window_params = [{pipeline_mode = #tpu.pipeline_mode<synchronous>, transform_indices = @transform_0, window_bounds = array<i64: 1, 1, 256>}, {pipeline_mode = #tpu.pipeline_mode<synchronous>, transform_indices = @transform_1, window_bounds = array<i64: 1, 1, 256>}, {pipeline_mode = #tpu.pipeline_mode<synchronous>, transform_indices = @transform_2, window_bounds = array<i64: 1, 1, 256>}, {transform_indices = @transform_3, window_bounds = array<i64: 1, 16, 256>}, {transform_indices = @transform_4, window_bounds = array<i64: 8, 16, 256>}]} {
    %c8_i32 = arith.constant 8 : i32
    %0 = arith.muli %arg0, %c8_i32 : i32
    %1 = tpu.iota {dimensions = array<i32: 0>} : vector<8x1x256xi32>
    %2 = vector.broadcast %0 : i32 to vector<8x1x256xi32>
    %3 = arith.addi %2, %1 : vector<8x1x256xi32>
    %4 = arith.sitofp %3 : vector<8x1x256xi32> to vector<8x1x256xf32>
    %c0 = arith.constant 0 : index
    %c0_0 = arith.constant 0 : index
    %c0_1 = arith.constant 0 : index
    %5 = vector.load %arg2[%c0, %c0_0, %c0_1] : memref<1x1x256xf32, #tpu.memory_space<vmem>>, vector<1x1x256xf32>
    %6 = vector.broadcast %5 : vector<1x1x256xf32> to vector<8x1x256xf32>
    %7 = arith.mulf %4, %6 : vector<8x1x256xf32>
    %c0_2 = arith.constant 0 : index
    %c0_3 = arith.constant 0 : index
    %c0_4 = arith.constant 0 : index
    %8 = vector.load %arg3[%c0_2, %c0_3, %c0_4] : memref<1x1x256xf32, #tpu.memory_space<vmem>>, vector<1x1x256xf32>
    %9 = vector.broadcast %8 : vector<1x1x256xf32> to vector<8x1x256xf32>
    %10 = arith.addf %7, %9 : vector<8x1x256xf32>
    %11 = math.sin %10 : vector<8x1x256xf32>
    %c0_5 = arith.constant 0 : index
    %c0_6 = arith.constant 0 : index
    %c0_7 = arith.constant 0 : index
    %12 = vector.load %arg4[%c0_5, %c0_6, %c0_7] : memref<1x1x256xi32, #tpu.memory_space<vmem>>, vector<1x1x256xi32>
    %c0_i32 = arith.constant 0 : i32
    %13 = vector.broadcast %c0_i32 : i32 to vector<1x1x256xi32>
    %14 = arith.cmpi ne, %12, %13 : vector<1x1x256xi32>
    %c0_8 = arith.constant 0 : index
    %c0_9 = arith.constant 0 : index
    %c0_10 = arith.constant 0 : index
    %15 = vector.load %arg5[%c0_8, %c0_9, %c0_10] : memref<1x16x256xf32, #tpu.memory_space<vmem>>, vector<1x16x256xf32>
    %16 = vector.shape_cast %14 : vector<1x1x256xi1> to vector<1x1x256xi1>
    %17 = vector.broadcast %16 : vector<1x1x256xi1> to vector<8x16x256xi1>
    %18 = vector.shape_cast %11 : vector<8x1x256xf32> to vector<8x1x256xf32>
    %19 = vector.broadcast %18 : vector<8x1x256xf32> to vector<8x16x256xf32>
    %20 = vector.shape_cast %15 : vector<1x16x256xf32> to vector<1x16x256xf32>
    %21 = vector.broadcast %20 : vector<1x16x256xf32> to vector<8x16x256xf32>
    %22 = arith.select %17, %19, %21 : vector<8x16x256xi1>, vector<8x16x256xf32>
    %c0_11 = arith.constant 0 : index
    %c0_12 = arith.constant 0 : index
    %c0_13 = arith.constant 0 : index
    %23 = vector.load %arg6[%c0_11, %c0_12, %c0_13] : memref<8x16x256xf32, #tpu.memory_space<vmem>>, vector<8x16x256xf32>
    tpu.vector_store %arg6[%c0_11, %c0_12, %c0_13], %22 {strides = array<i32>} : memref<8x16x256xf32, #tpu.memory_space<vmem>>, vector<8x16x256xf32>,
    return
  }
  func.func @transform_0(%arg0: i32, %arg1: i32) -> (i32, i32, i32) {
    %c0_i32 = arith.constant 0 : i32
    %c0_i32_0 = arith.constant 0 : i32
    %c0_i32_1 = arith.constant 0 : i32
    %c0_i32_2 = arith.constant 0 : i32
    return %c0_i32, %c0_i32_0, %c0_i32_1 : i32, i32, i32
  }
  func.func @transform_1(%arg0: i32, %arg1: i32) -> (i32, i32, i32) {
    %c0_i32 = arith.constant 0 : i32
    %c0_i32_0 = arith.constant 0 : i32
    %c0_i32_1 = arith.constant 0 : i32
    %c0_i32_2 = arith.constant 0 : i32
    return %c0_i32, %c0_i32_0, %c0_i32_1 : i32, i32, i32
  }
  func.func @transform_2(%arg0: i32, %arg1: i32) -> (i32, i32, i32) {
    %c0_i32 = arith.constant 0 : i32
    %c0_i32_0 = arith.constant 0 : i32
    %c0_i32_1 = arith.constant 0 : i32
    %c0_i32_2 = arith.constant 0 : i32
    return %c0_i32, %c0_i32_0, %c0_i32_1 : i32, i32, i32
  }
  func.func @transform_3(%arg0: i32, %arg1: i32) -> (i32, i32, i32) {
    %c0_i32 = arith.constant 0 : i32
    %c0_i32_0 = arith.constant 0 : i32
    %c0_i32_1 = arith.constant 0 : i32
    return %c0_i32, %arg1, %c0_i32_0 : i32, i32, i32
  }
  func.func @transform_4(%arg0: i32, %arg1: i32) -> (i32, i32, i32) {
    %c0_i32 = arith.constant 0 : i32
    %c0_i32_0 = arith.constant 0 : i32
    return %arg0, %arg1, %c0_i32 : i32, i32, i32
  }
}

</mosaic_0001>

<bundles_post_ra>
// kernel: tpu_custom_call.1
= control target key start
LH: loop header
LB: loop body
LE: loop exit
PB: predicated region body
PF: predicated region fallthrough
CT: control target
= control target key end

     0   :  { %s2963_s0 = inlined_call_operand.hbm [shape: f32[1,1,256], index: 0, kind: input, shape index: {}]   ;;  %s2964_s1 = inlined_call_operand.hbm [shape: f32[1,1,256], index: 1, kind: input, shape index: {}]   ;;  %s2965_s2 = inlined_call_operand.hbm [shape: s32[1,1,256], index: 2, kind: input, shape index: {}]   ;;  %s2966_s3 = inlined_call_operand.hbm [shape: f32[1,16,256], index: 3, kind: input, shape index: {}]   ;;  %s2967_s4 = inlined_call_operand.hbm [shape: f32[16,16,256], index: 4, kind: output, shape index: {}]  }
   0x1   :  { %2972 = sst [smem:[#allocation15_spill]] %s2964_s1 }
   0x2   :  { %9 = vsyncpa [#allocation3], 0 }
   0x3   :  { %10 = vsyncpa [#allocation6], 0 }
   0x4   :  { %11 = vsyncpa [#allocation9], 0 }
   0x5   :  { %12 = vsyncpa [#allocation4], 0 }
   0x6   :  { %14 = vsyncpa [#allocation4 + $0x1], 0  ;;  %s1889_s15 = smov 0   ;;  %s1891_s16 = smov 0  }
   0x7   :  { %s1893_s17 = smov 0   ;;  %s1895_s18 = smov 0  }
   0x8   :  { %s1897_s19 = smov 0   ;;  %s1899_s20 = smov 0  }
   0x9 LB: > { %s1413_s21 = sadd.s32 4294967295, %s1846_s20   ;;  %s1414_s22 = sadd.s32 4294967294, %s1846_s20   ;;  %s1846_s20 = sphi %s1899_s20, %s20_s20   ;;  %s1842_s19 = sphi %s1897_s19, %s3004_s19   ;;  %s1838_s18 = sphi %s1895_s18, %s3003_s18   ;;  %s1834_s17 = sphi %s1893_s17, %s3002_s17   ;;  %s1830_s16 = sphi %s1891_s16, %s3001_s16   ;;  %s1826_s15 = sphi %s1889_s15, %s3000_s15  }
   0xa   : > { %s32_s23 = sadd.s32 1, %s1842_s19  ;;  %s130_s24 = sadd.s32 1, %s1834_s17 }
   0xb   : > { %p34_p0 = scmp.ge.s32.totalorder %s32_s23, 2  ;;  %p140_p1 = scmp.ne.s32.totalorder %s1834_s17, %s1830_s16 }
   0xc   : > { %p141_p2 = scmp.eq.s32.totalorder %s1413_s21, 1  ;;  %p146_p3 = scmp.ne.s32.totalorder %s1830_s16, %s1826_s15 }
   0xd   : > { %s3006_s23 = smov (%p34_p0, %s32_s23), 0  ;;  %p147_p5 = scmp.eq.s32.totalorder %s1414_s22, 1 }
   0xe   : > { %p1929_p4 = por %p141_p2, %p140_p1  ;;  %s125_s26 = ssub.s32 %s1842_s19, %s3006_s23 }
   0xf   : > { %p1415_p6 = scmp.ge.s32.totalorder %s1846_s20, 1  ;;  %p128_p7 = scmp.eq.s32.totalorder %s125_s26, 0 }
  0x10   : > { %s2973_s25 = scalar_select %p1929_p4, 1, 0 }
  0x11   : > { %p1936_p8 = por %p147_p5, %p146_p3  ;;  %p154_p9 = scmp.lt.s32.totalorder %s1846_s20, 3 }
  0x12   : > { %s1942_s28 = scalar_select %p128_p7, %s1834_s17, %s130_s24  }
  0x13   : > { %s2974_s27 = scalar_select %p1936_p8, 1, 0 }
  0x14   : > { %p1944_p10 = pnand %p1415_p6, %p154_p9  ;;  %p1948_p11 = scmp.eq.s32.totalorder %s1413_s21, 0 }
  0x15   : > { %s1848_s5 = smov [#allocation5]   ;;  %s1849_s8 = smov [#allocation2]  }
  0x16   : > { %s2975_s29 = scalar_select %p1944_p10, 1, 0 }
  0x17   : > { %s2976_s30 = scalar_select %p1948_p11, 1, 0 }
  0x18   : > { %p1517_p12 = pneg %p1944_p10  ;;  %s178_s6 = sshll.u32 %s1848_s5, 4  ;;  %s179_s6 = int_to_ptr.vmem [resolvable:$true] %s178_s6 }
  0x19   : > { %s167_s9 = sshll.u32 %s1849_s8, 4  ;;  %s2978_s1 = sld [smem:[#allocation15_spill]]  ;;  %s1960_s9 = int_to_ptr.vmem [resolvable:$true] %s167_s9 }
  0x1a   : > { %p1956_p13 = pnand %p1948_p11, %p1517_p12 }
  0x1c   : > { %p1970_p1 = pneg %p1956_p13 }
  0x1f   : > { %s1644_s12 = scalar_lea.hbm %s2978_s1, 32 }
  0x20   : > { %p1645_p0 = scmp.ne.s32.totalorder %s2978_s1, %s1644_s12  ;;  %p1651_p5 = scmp.lt.u32.totalorder %s1644_s12, %s2978_s1 }
  0x22   : > { %p1647_p2 = pnand %p1970_p1, %p1645_p0 }
  0x24   : > { %p1648_p3 = pneg %p1647_p2 }
  0x26   : > { %p1653_p6 = pnand %p1651_p5, %p1648_p3 }
  0x28   : > { %1656 = shalt.err (!%p1653_p6)
}
  0x29   : > { %s1657_s26 = scalar_lea.vmem %s179_s6, 32  ;;  %p1665_p8 = scmp.lt.s32.totalorder %s179_s6, %s179_s6 }
  0x2a   : > { %p1658_p7 = scmp.ne.s32.totalorder %s179_s6, %s1657_s26  ;;  %p1666_p4 = scmp.lt.s32.totalorder %s1657_s26, %s1657_s26 }
  0x2c   : > { %p1660_p9 = pnand %p1658_p7, %p1970_p1  ;;  %p1667_p11 = por %p1666_p4, %p1665_p8 }
  0x2e   : > { %p1661_p12 = pneg %p1660_p9 }
  0x30   : > { %p1668_p10 = pnand %p1667_p11, %p1661_p12 }
  0x32   : > { %1671 = shalt.err (!%p1668_p10)
}
  0x33   : > { %1523 = dma.hbm_to_vmem [thread:$0]  (!%p1956_p13), %s2978_s1, 32, %s179_s6, [#allocation6]  }
  0x34   : > { %s1672_s12 = scalar_lea.hbm %s2963_s0, 32 }
  0x35   : > { %p1673_p0 = scmp.ne.s32.totalorder %s2963_s0, %s1672_s12  ;;  %p1679_p8 = scmp.lt.u32.totalorder %s1672_s12, %s2963_s0 }
  0x37   : > { %p1675_p2 = pnand %p1673_p0, %p1970_p1 }
  0x39   : > { %p1676_p4 = pneg %p1675_p2 }
  0x3b   : > { %p1681_p10 = pnand %p1679_p8, %p1676_p4 }
  0x3d   : > { %1684 = shalt.err (!%p1681_p10)
}
  0x3e   : > { %s1685_s6 = scalar_lea.vmem %s1960_s9, 32  ;;  %p1693_p6 = scmp.lt.s32.totalorder %s1960_s9, %s1960_s9 }
  0x3f   : > { %p1686_p11 = scmp.ne.s32.totalorder %s1960_s9, %s1685_s6  ;;  %p1694_p7 = scmp.lt.s32.totalorder %s1685_s6, %s1685_s6 }
  0x41   : > { %p1688_p3 = pnand %p1686_p11, %p1970_p1  ;;  %p1695_p9 = por %p1694_p7, %p1693_p6 }
  0x43   : > { %p1689_p5 = pneg %p1688_p3 }
  0x45   : > { %p1696_p12 = pnand %p1695_p9, %p1689_p5 }
  0x47   : > { %1699 = shalt.err (!%p1696_p12)
}
  0x48   : > { %1520 = dma.hbm_to_vmem [thread:$0]  (!%p1956_p13), %s2963_s0, 32, %s1960_s9, [#allocation3]  }
  0x49   : > { %s1850_s8 = smov [#allocation7]   ;;  %s1851_s11 = smov [#allocation8]  }
  0x4a   : > { %s189_s10 = sshll.u32 %s1850_s8, 4  ;;  %s203_s12 = sshll.u32 %s1851_s11, 4  ;;  %s190_s10 = int_to_ptr.vmem [resolvable:$true] %s189_s10  ;;  %s204_s12 = int_to_ptr.vmem [resolvable:$true] %s203_s12 }
  0x4b   : > { %s1700_s22 = scalar_lea.hbm %s2965_s2, 32 }
  0x4c   : > { %p1701_p0 = scmp.ne.s32.totalorder %s2965_s2, %s1700_s22  ;;  %p1707_p8 = scmp.lt.u32.totalorder %s1700_s22, %s2965_s2 }
  0x4e   : > { %p1703_p2 = pnand %p1701_p0, %p1970_p1 }
  0x50   : > { %p1704_p4 = pneg %p1703_p2 }
  0x52   : > { %p1709_p10 = pnand %p1707_p8, %p1704_p4 }
  0x54   : > { %1712 = shalt.err (!%p1709_p10)
}
  0x55   : > { %s1713_s9 = scalar_lea.vmem %s190_s10, 32  ;;  %p1721_p6 = scmp.lt.s32.totalorder %s190_s10, %s190_s10 }
  0x56   : > { %p1714_p11 = scmp.ne.s32.totalorder %s190_s10, %s1713_s9  ;;  %p1722_p7 = scmp.lt.s32.totalorder %s1713_s9, %s1713_s9 }
  0x58   : > { %p1716_p3 = pnand %p1714_p11, %p1970_p1  ;;  %p1723_p9 = por %p1722_p7, %p1721_p6 }
  0x5a   : > { %p1717_p5 = pneg %p1716_p3 }
  0x5c   : > { %p1724_p12 = pnand %p1723_p9, %p1717_p5 }
  0x5e   : > { %1727 = shalt.err (!%p1724_p12)
}
  0x5f   : > { %1526 = dma.hbm_to_vmem [thread:$0]  (!%p1956_p13), %s2965_s2, 32, %s190_s10, [#allocation6]  }
  0x60   : > { %s1728_s13 = scalar_lea.hbm %s2966_s3, 512 }
  0x61   : > { %p1729_p0 = scmp.ne.s32.totalorder %s2966_s3, %s1728_s13  ;;  %p1735_p8 = scmp.lt.u32.totalorder %s1728_s13, %s2966_s3 }
  0x63   : > { %p1731_p2 = pnand %p1729_p0, %p1970_p1 }
  0x65   : > { %p1732_p4 = pneg %p1731_p2 }
  0x67   : > { %p1737_p10 = pnand %p1735_p8, %p1732_p4 }
  0x69   : > { %1740 = shalt.err (!%p1737_p10)
}
  0x6a   : > { %s1741_s26 = scalar_lea.vmem %s204_s12, 512  ;;  %p1749_p6 = scmp.lt.s32.totalorder %s204_s12, %s204_s12 }
  0x6b   : > { %p1742_p11 = scmp.ne.s32.totalorder %s204_s12, %s1741_s26  ;;  %p1750_p7 = scmp.lt.s32.totalorder %s1741_s26, %s1741_s26 }
  0x6d   : > { %p1744_p3 = pnand %p1742_p11, %p1970_p1  ;;  %p1751_p9 = por %p1750_p7, %p1749_p6 }
  0x6f   : > { %p1745_p5 = pneg %p1744_p3 }
  0x71   : > { %p1752_p12 = pnand %p1751_p9, %p1745_p5 }
  0x73   : > { %1755 = shalt.err (!%p1752_p12)
}
  0x74   : > { %s1852_s10 = smov 256   ;;  %s1853_s9 = smov 16  }
  0x75   : > { %1529 = dma.hbm_to_vmem [thread:$0]  (!%p1956_p13), %s2966_s3, 512, %s204_s12, [#allocation9], %s1852_s10, %s1852_s10, %s1853_s9  }
  0x76   : > { %p2980_p0 = scmp.ne.s32.totalorder %s2975_s29, 0 }
  0x77   : > { %p2981_p2 = scmp.ne.s32.totalorder (!%p2980_p0), %s2976_s30, 0 }
  0x78   : > { %219 = sbr.rel (%p2980_p0) target bundleno = 415 (0x19f), region = 36 }
  0x7f   : > { %1809 = dma.done.wait (%p2981_p2), [#allocation3], 32  }
  0x80   : > { %1811 = vsyncadd (%p2981_p2), [#allocation3], 4294967264 }
  0x81   : > { %1813 = dma.done.wait (%p2981_p2), [#allocation6], 64  }
  0x82   : > { %1815 = vsyncadd (%p2981_p2), [#allocation6], 4294967232 }
  0x83   : > { %1817 = dma.done.wait (%p2981_p2), [#allocation9], 512  }
  0x84   : > { %1819 = vsyncadd (%p2981_p2), [#allocation9], 4294966784  ;;  %s1426_s29 = sshll.u32 %s1838_s18, 3  ;;  %v2065_v6 = vld [vmem:[#allocation2] sm:$0x3]  ;;  %v1129_v12 = vlaneseq  ;;  %v1854_v41 = vmov 0  }
  0x85   : > { %v2060_v0 = vstv %s1426_s29  ;;  %v2067_v7 = vld [vmem:[#allocation5] sm:$0x3]  ;;  %v1122_v23 = vld [vmem:[#allocation7] sm:$0x3]  ;;  %v1855_v53 = vmov 683565275  }
  0x86   : > { %v257_v1 = vadd.s32 1, %v2060_v0  ;;  %v258_v2 = vadd.s32 2, %v2060_v0  ;;  %v264_v3 = vcvt.s32.f32 %v2060_v0  ;;  %v1130_v19 = vshrl.u32 %v1129_v12, 7  ;;  %s249_s30 = sand.u32 1, %s1830_s16   ;;  %s1466_s12 = sshll.u32 %s1838_s18, 12 }
  0x87   : > { %v259_v21 = vadd.s32 3, %v2060_v0  ;;  %v2091_v27 = vadd.s32 4, %v2060_v0  ;;  %v2095_v29 = vadd.s32 5, %v2060_v0  ;;  %vm1123_vm0 = vcmp.ne.s32.totalorder %v1122_v23, 0  ;;  %s2384_s7 = sshll.u32 %s249_s30, 8  ;;  %s2899_s14 = scalar_lea.hbm %s2967_s4, %s1466_s12 }
  0x88   : > { %v265_v4 = vcvt.s32.f32 %v257_v1  ;;  %v266_v5 = vcvt.s32.f32 %v258_v2  ;;  %v273_v8 = vmul.f32 %v2065_v6, %v264_v3  ;;  %v2097_v34 = vsub.s32 0, %v1130_v19  ;;  %s2440_s21 = scalar_lea.vmem [#allocation10], %s2384_s7  ;;  %s2917_s18 = scalar_lea.sflag [#allocation4], %s249_s30 }
  0x89   : > { %v267_v32 = vcvt.s32.f32 %v259_v21  ;;  %v2099_v37 = vsub.s32 1, %v1130_v19  ;;  %v268_v39 = vcvt.s32.f32 %v2091_v27  ;;  %v2102_v42 = vsel %vm1123_vm0, 1, %v1854_v41  ;;  %s1309_s1 = sshll.u32 %s2440_s21, 4  ;;  %p2998_p1 = scmp.ne.s32.totalorder %s2973_s25, 0  ;;  %s2901_s1 = int_to_ptr.vmem [resolvable:$true] %s1309_s1 }
  0x8a   : > { %v274_v9 = vmul.f32 %v2065_v6, %v265_v4  ;;  %v275_v10 = vmul.f32 %v2065_v6, %v266_v5  ;;  %v2073_v11 = vadd.f32 %v2067_v7, %v273_v8  ;;  %v269_v44 = vcvt.s32.f32 %v2095_v29  ;;  %s1756_s22 = scalar_lea.vmem %s2901_s1, 4096  ;;  %s1861_s24 = smov [#allocation10]  }
  0x8b   : > { %v2106_v47 = vmul.f32 %v2065_v6, %v267_v32  ;;  %v1856_v55 = vmov 2475754826   ;;  %v1857_v57 = vmov 2131351028   ;;  %v1858_v59 = vmov 2102212464   ;;  %p1757_p13 = scmp.ne.s32.totalorder %s2901_s1, %s1756_s22 }
  0x8c   : > { %v2076_v13 = vadd.f32 %v2067_v7, %v274_v9  ;;  %v290_v14 = vand.u32 2147483647, %v2073_v11  ;;  %v293_v15 = vand.u32 2139095040, %v2073_v11  ;;  %v2082_v17 = vadd.f32 %v2067_v7, %v275_v10  ;;  %s1760_s6 = sshll.u32 %s1861_s24, 4  ;;  %s1761_s6 = int_to_ptr.vmem [resolvable:$false] %s1760_s6 }
  0x8d   : > { %v1859_v61 = vmov 920167782   ;;  %v1860_v8 = vmov 1326507024   ;;  %vm292_vm14 = vcmp.lt.s32.totalorder %v2073_v11, 0  ;;  %p1758_p4 = pnand %p1757_p13, %p2998_p1  ;;  %s1762_s26 = scalar_lea.vmem %s1761_s6, 8192 }
  0x8e   : > { %v394_v16 = vand.u32 2147483647, %v2076_v13  ;;  %v294_v18 = vshrl.u32 %v293_v15, 23  ;;  %v397_v20 = vand.u32 2139095040, %v2076_v13  ;;  %v297_v22 = vand.u32 8388607, %v290_v14  ;;  %p1763_p10 = scmp.lt.s32.totalorder %s2901_s1, %s1761_s6  ;;  %p1764_p11 = scmp.lt.s32.totalorder %s1762_s26, %s1756_s22 }
  0x8f   : > { %v501_v28 = vand.u32 2139095040, %v2082_v17  ;;  %v498_v51 = vand.u32 2147483647, %v2082_v17  ;;  %vm2236_vm0 = vcmp.le.f32.partialorder %v290_v14, 0.7853982  ;;  %p1759_p8 = pneg %p1758_p4 }
  0x90   : > { %v401_v24 = vand.u32 8388607, %v394_v16  ;;  %v1427_v25 = vadd.s32 4294967169, %v294_v18  ;;  %v398_v26 = vshrl.u32 %v397_v20, 23  ;;  %v298_v33 = vor.u32 8388608, %v297_v22  ;;  %p1765_p3 = por %p1764_p11, %p1763_p10 }
  0x91   : > { %v502_v36 = vshrl.u32 %v501_v28, 23 }
  0x92   : > { %v300_v30 = vadd.s32 1, %v1427_v25  ;;  %v1431_v31 = vadd.s32 4294967169, %v398_v26  ;;  %v402_v35 = vor.u32 8388608, %v401_v24  ;;  %v2108_v48 = vshll.u32 %v298_v33, 8  ;;  %p1766_p5 = pnand %p1765_p3, %p1759_p8 }
  0x93   : > { %v1435_v43 = vadd.s32 4294967169, %v502_v36 }
  0x94   : > { %vm301_vm1 = vcmp.gt.s32.totalorder %v300_v30, 0  ;;  %v404_v38 = vadd.s32 1, %v1431_v31  ;;  %v2110_v50 = vshll.u32 %v402_v35, 8 }
  0x95   : > { %v302_v40 = vsel %vm301_vm1, %v300_v30, 0  ;;  %v2118_v63 = vadd.s32 1, %v1435_v43 }
  0x96   : > { %v303_v45 = vshrl.u32 %v302_v40, 5  ;;  %v304_v46 = vand.u32 31, %v302_v40  ;;  %vm405_vm2 = vcmp.gt.s32.totalorder %v404_v38, 0 }
  0x97   : > { %v406_v49 = vsel %vm405_vm2, %v404_v38, 0  ;;  %vm509_vm9 = vcmp.gt.s32.totalorder %v2118_v63, 0 }
  0x98   : > { %v305_v52 = vsub.s32 32, %v304_v46  ;;  %v307_v54 = vshll.u32 %v1855_v53, %v304_v46  ;;  %v310_v56 = vshll.u32 %v1856_v55, %v304_v46  ;;  %v313_v58 = vshll.u32 %v1857_v57, %v304_v46 }
  0x99   : > { %v316_v60 = vshll.u32 %v1858_v59, %v304_v46  ;;  %v319_v62 = vshll.u32 %v1859_v61, %v304_v46  ;;  %vm322_vm3 = vcmp.lt.s32.totalorder %v303_v45, 1  ;;  %vm323_vm4 = vcmp.lt.s32.totalorder %v303_v45, 2 }
  0x9a   : > { %v306_v1 = vshrl.u32 %v1855_v53, %v305_v52  ;;  %v308_v2 = vshrl.u32 %v1856_v55, %v305_v52  ;;  %v311_v3 = vshrl.u32 %v1857_v57, %v305_v52  ;;  %v314_v4 = vshrl.u32 %v1858_v59, %v305_v52 }
  0x9b   : > { %v317_v5 = vshrl.u32 %v1859_v61, %v305_v52  ;;  %v320_v9 = vshrl.u32 %v1860_v8, %v305_v52  ;;  %vm324_vm5 = vcmp.lt.s32.totalorder %v303_v45, 3  ;;  %vm325_vm6 = vcmp.lt.s32.totalorder %v303_v45, 4 }
  0x9c   : > { %v309_v10 = vor.u32 %v308_v2, %v307_v54  ;;  %v312_v12 = vor.u32 %v311_v3, %v310_v56  ;;  %v315_v15 = vor.u32 %v314_v4, %v313_v58  ;;  %v407_v20 = vshrl.u32 %v406_v49, 5 }
  0x9d   : > { %v318_v18 = vor.u32 %v317_v5, %v316_v60  ;;  %v321_v19 = vor.u32 %v320_v9, %v319_v62  ;;  %v408_v21 = vand.u32 31, %v406_v49 }
  0x9e   : > { %v326_v22 = vsel %vm322_vm3, %v306_v1, %v309_v10  ;;  %v327_v23 = vsel %vm325_vm6, %v315_v15, 2102212464  ;;  %v330_v24 = vsel %vm322_vm3, %v309_v10, %v312_v12  ;;  %v334_v25 = vsel %vm322_vm3, %v312_v12, %v315_v15 }
  0x9f   : > { %v328_v26 = vsel %vm324_vm5, %v312_v12, %v327_v23  ;;  %v331_v28 = vsel %vm325_vm6, %v318_v18, 920167782  ;;  %v335_v30 = vsel %vm325_vm6, %v321_v19, 1326507024  ;;  %v409_v31 = vsub.s32 32, %v408_v21 }
  0xa0   : > { %v329_v32 = vsel %vm323_vm4, %v326_v22, %v328_v26  ;;  %v332_v33 = vsel %vm324_vm5, %v315_v15, %v331_v28  ;;  %v336_v35 = vsel %vm324_vm5, %v318_v18, %v335_v30  ;;  %v411_v36 = vshll.u32 %v1855_v53, %v408_v21 }
  0xa1   : > { %v333_v38 = vsel %vm323_vm4, %v330_v24, %v332_v33  ;;  %v337_v40 = vsel %vm323_vm4, %v334_v25, %v336_v35  ;;  %v345_v41 = vmul.u32 %v2108_v48, %v329_v32  ;;  %v410_v43 = vshrl.u32 %v1855_v53, %v409_v31 }
  0xa2   : > { %v2139_v46 = vmul.u32.u64.low %v2108_v48, %v337_v40  ;;  %v2140_v49 = vmul.u32.u64.high %v2108_v48, %v337_v40, %v2139_v46  ;;  %v2143_v52 = vmul.u32.u64.low %v2108_v48, %v333_v38  ;;  %v2144_v54 = vmul.u32.u64.high %v2108_v48, %v333_v38, %v2143_v52 }
  0xa3   : > { %v412_v56 = vshrl.u32 %v1856_v55, %v409_v31  ;;  %v414_v58 = vshll.u32 %v1856_v55, %v408_v21  ;;  %v415_v45 = vshrl.u32 %v1857_v57, %v409_v31  ;;  %v417_v60 = vshll.u32 %v1857_v57, %v408_v21 }
  0xa4   : > { %v418_v62 = vshrl.u32 %v1858_v59, %v409_v31  ;;  %v420_v1 = vshll.u32 %v1858_v59, %v408_v21  ;;  %v421_v2 = vshrl.u32 %v1859_v61, %v409_v31  ;;  %v423_v3 = vshll.u32 %v1859_v61, %v408_v21 }
  0xa5   : > { %v413_v4 = vor.u32 %v412_v56, %v411_v36  ;;  %v416_v48 = vor.u32 %v415_v45, %v414_v58  ;;  %v424_v5 = vshrl.u32 %v1860_v8, %v409_v31  ;;  %vm426_vm7 = vcmp.lt.s32.totalorder %v407_v20, 1 }
  0xa6   : > { %vm347_vm8 = vc.u32 %v2140_v49, %v2143_v52  ;;  %v348_v9 = vadd.s32 1, %v2144_v54  ;;  %v419_v10 = vor.u32 %v418_v62, %v417_v60  ;;  %v422_v12 = vor.u32 %v421_v2, %v420_v1 }
  0xa7   : > { %v425_v15 = vor.u32 %v424_v5, %v423_v3  ;;  %vm427_vm10 = vcmp.lt.s32.totalorder %v407_v20, 2  ;;  %vm428_vm11 = vcmp.lt.s32.totalorder %v407_v20, 3  ;;  %vm429_vm12 = vcmp.lt.s32.totalorder %v407_v20, 4 }
  0xa8   : > { %v349_v18 = vsel %vm347_vm8, %v348_v9, %v2144_v54  ;;  %v430_v19 = vsel %vm426_vm7, %v410_v43, %v413_v4  ;;  %v434_v21 = vsel %vm426_vm7, %v413_v4, %v416_v48  ;;  %v431_v23 = vsel %vm429_vm12, %v419_v10, 2102212464 }
  0xa9   : > { %v350_v22 = vadd.s32 %v349_v18, %v345_v41  ;;  %v435_v24 = vsel %vm429_vm12, %v422_v12, 920167782  ;;  %v438_v25 = vsel %vm426_vm7, %v416_v48, %v419_v10  ;;  %v432_v26 = vsel %vm428_vm11, %v416_v48, %v431_v23 }
  0xaa   : > { %v436_v28 = vsel %vm428_vm11, %v419_v10, %v435_v24  ;;  %v439_v30 = vsel %vm429_vm12, %v425_v15, 1326507024  ;;  %v277_v31 = vmul.f32 %v2065_v6, %v268_v39  ;;  %v510_v36 = vsel %vm509_vm9, %v2118_v63, 0 }
  0xab   : > { %v351_v32 = vadd.s32 536870912, %v350_v22  ;;  %v437_v33 = vsel %vm427_vm10, %v434_v21, %v436_v28  ;;  %v440_v35 = vsel %vm428_vm11, %v422_v12, %v439_v30  ;;  %v433_v38 = vsel %vm427_vm10, %v430_v19, %v432_v26 }
  0xac   : > { %v441_v40 = vsel %vm427_vm10, %v438_v25, %v440_v35  ;;  %v2174_v41 = vmul.u32.u64.low %v2110_v50, %v437_v33  ;;  %v2175_v43 = vmul.u32.u64.high %v2110_v50, %v437_v33, %v2174_v41  ;;  %v505_v54 = vand.u32 8388607, %v498_v51 }
  0xad   : > { %v2178_v27 = vshrl.u32 %v351_v32, 30  ;;  %v2181_v39 = vmul.u32.u64.low %v2110_v50, %v441_v40  ;;  %v2182_v46 = vmul.u32.u64.high %v2110_v50, %v441_v40, %v2181_v39  ;;  %v512_v56 = vand.u32 31, %v510_v36 }
  0xae   : > { %v2188_v63 = vadd.f32 %v2067_v7, %v2106_v47  ;;  %v449_v58 = vmul.u32 %v2110_v50, %v433_v38  ;;  %v2195_v45 = vmul.f32 %v2065_v6, %v269_v44  ;;  %v1132_v60 = vrot.slane %v2102_v42, %v2097_v34 }
  0xaf   : > { %v353_v20 = vshll.u32 %v2178_v27, 30  ;;  %v1136_v62 = vrot.slane %v2102_v42, %v2099_v37  ;;  %v452_v1 = vadd.s32 1, %v2175_v43  ;;  %v513_v2 = vsub.s32 32, %v512_v56 }
  0xb0   : > { %vm451_vm13 = vc.u32 %v2182_v46, %v2174_v41  ;;  %v506_v50 = vor.u32 8388608, %v505_v54  ;;  %v2207_v29 = vadd.f32 %v2067_v7, %v277_v31  ;;  %v515_v44 = vshll.u32 %v1855_v53, %v512_v56 }
  0xb1   : > { %v2202_v47 = vsub.s32 %v350_v22, %v353_v20  ;;  %v453_v6 = vsel %vm451_vm13, %v452_v1, %v2175_v43  ;;  %v518_v3 = vshll.u32 %v1856_v55, %v512_v56  ;;  %v605_v4 = vand.u32 2139095040, %v2188_v63 }
  0xb2   : > { %v454_v5 = vadd.s32 %v453_v6, %v449_v58  ;;  %v516_v9 = vshrl.u32 %v1856_v55, %v513_v2  ;;  %v519_v10 = vshrl.u32 %v1857_v57, %v513_v2  ;;  %v2216_v12 = vshrl.u32 %v510_v36, 5 }
  0xb3   : > { %v356_v48 = vsub.s32 0, %v2202_v47  ;;  %v521_v15 = vshll.u32 %v1857_v57, %v512_v56  ;;  %v522_v18 = vshrl.u32 %v1858_v59, %v513_v2  ;;  %v524_v19 = vshll.u32 %v1858_v59, %v512_v56 }
  0xb4   : > { %v455_v22 = vadd.s32 536870912, %v454_v5  ;;  %v2223_v23 = vshll.u32 %v506_v50, 8  ;;  %v602_v24 = vand.u32 2147483647, %v2188_v63  ;;  %v525_v25 = vshrl.u32 %v1859_v61, %v513_v2 }
  0xb5   : > { %v1428_v21 = vmin.u32 %v356_v48, %v2202_v47  ;;  %v527_v26 = vshll.u32 %v1859_v61, %v512_v56  ;;  %v528_v28 = vshrl.u32 %v1860_v8, %v513_v2  ;;  %v606_v30 = vshrl.u32 %v605_v4, 23 }
  0xb6   : > { %v346_v31 = vadd.s32 %v2143_v52, %v2140_v49  ;;  %v517_v33 = vor.u32 %v516_v9, %v515_v44  ;;  %v520_v35 = vor.u32 %v519_v10, %v518_v3  ;;  %v2231_v36 = vshrl.u32 %v455_v22, 30 }
  0xb7   : > { %v358_v32 = vclz %v1428_v21  ;;  %v523_v38 = vor.u32 %v522_v18, %v521_v15  ;;  %v526_v40 = vor.u32 %v525_v25, %v524_v19  ;;  %vm530_vm15 = vcmp.lt.s32.totalorder %v2216_v12, 1 }
  0xb8   : > { %v376_v54 = vsub.s32 4, %v2178_v27  ;;  %vm532_vm1 = vcmp.lt.s32.totalorder %v2216_v12, 3  ;;  %vm533_vm2 = vcmp.lt.s32.totalorder %v2216_v12, 4  ;;  %v457_v49 = vshll.u32 %v2231_v36, 30 }
  0xb9   : > { %v1429_v39 = vadd.s32 4294967294, %v358_v32  ;;  %v514_v52 = vshrl.u32 %v1855_v53, %v513_v2  ;;  %v529_v56 = vor.u32 %v528_v28, %v527_v26  ;;  %v539_v20 = vsel %vm533_vm2, %v526_v40, 920167782 }
  0xba   : > { %vm531_vm4 = vcmp.lt.s32.totalorder %v2216_v12, 2  ;;  %v538_v14 = vsel %vm530_vm15, %v517_v33, %v520_v35  ;;  %v1439_v58 = vadd.s32 4294967169, %v606_v30  ;;  %v2250_v50 = vsub.s32 %v454_v5, %v457_v49 }
  0xbb   : > { %vm1430_vm3 = vcmp.lt.s32.totalorder %v1429_v39, 0  ;;  %v535_v6 = vsel %vm533_vm2, %v523_v38, 2102212464  ;;  %v540_v2 = vsel %vm532_vm1, %v523_v38, %v539_v20  ;;  %v542_v48 = vsel %vm530_vm15, %v520_v35, %v523_v38 }
  0xbc   : > { %v361_v1 = vsel %vm1430_vm3, 0, %v1429_v39  ;;  %v377_v9 = vsel %vm292_vm14, %v376_v54, %v2178_v27  ;;  %vm396_vm5 = vcmp.lt.s32.totalorder %v2076_v13, 0  ;;  %v460_v5 = vsub.s32 0, %v2250_v50 }
  0xbd   : > { %v362_v44 = vsub.s32 32, %v361_v1  ;;  %v363_v3 = vshll.u32 %v2202_v47, %v361_v1  ;;  %v366_v4 = vsub.s32 4294967266, %v361_v1  ;;  %v534_v10 = vsel %vm530_vm15, %v514_v52, %v517_v33 }
  0xbe   : > { %v543_v15 = vsel %vm533_vm2, %v529_v56, 1326507024  ;;  %v536_v19 = vsel %vm532_vm1, %v520_v35, %v535_v6  ;;  %v1432_v27 = vmin.u32 %v460_v5, %v2250_v50  ;;  %v541_v22 = vsel %vm531_vm4, %v538_v14, %v540_v2 }
  0xbf   : > { %v364_v18 = vshrl.u32 %v346_v31, %v362_v44  ;;  %v367_v47 = vadd.s32 127, %v366_v4  ;;  %v544_v21 = vsel %vm532_vm1, %v526_v40, %v543_v15  ;;  %v612_v26 = vadd.s32 1, %v1439_v58 }
  0xc0   : > { %v545_v25 = vsel %vm531_vm4, %v542_v48, %v544_v21  ;;  %v379_v33 = vsel %vm2236_vm0, 0, %v377_v9  ;;  %v462_v35 = vclz %v1432_v27  ;;  %v480_v38 = vsub.s32 4, %v2231_v36 }
  0xc1   : > { %v365_v28 = vor.u32 %v364_v18, %v363_v3  ;;  %v368_v30 = vshll.u32 %v367_v47, 23  ;;  %v2278_v31 = vmul.u32.u64.low %v2223_v23, %v545_v25  ;;  %v2279_v32 = vmul.u32.u64.high %v2223_v23, %v545_v25, %v2278_v31 }
  0xc2   : > { %v537_v40 = vsel %vm531_vm4, %v534_v10, %v536_v19  ;;  %v2287_v49 = vmul.u32.u64.low %v2223_v23, %v541_v22  ;;  %v2288_v52 = vmul.u32.u64.high %v2223_v23, %v541_v22, %v2287_v49  ;;  %vm2293_vm6 = vcmp.le.f32.partialorder %v394_v16, 0.7853982 }
  0xc3   : > { %v369_v39 = vor.u32 4788187, %v368_v30  ;;  %v372_v54 = vcvt.s32.f32 %v365_v28  ;;  %v1433_v20 = vadd.s32 4294967294, %v462_v35  ;;  %v2299_v14 = vand.u32 8388607, %v602_v24 }
  0xc4   : > { %vm613_vm7 = vcmp.gt.s32.totalorder %v612_v26, 0  ;;  %v383_v58 = vadd.s32 3, %v379_v33  ;;  %v450_v1 = vadd.s32 %v2174_v41, %v2182_v46  ;;  %v553_v2 = vmul.u32 %v2223_v23, %v537_v40 }
  0xc5   : > { %v370_v12 = vand.u32 2147483647, %v369_v39  ;;  %v614_v6 = vsel %vm613_vm7, %v612_v26, 0  ;;  %vm1434_vm8 = vcmp.lt.s32.totalorder %v1433_v20, 0  ;;  %vm555_vm9 = vc.u32 %v2279_v32, %v2287_v49 }
  0xc6   : > { %v616_v16 = vand.u32 31, %v614_v6  ;;  %v465_v3 = vsel %vm1434_vm8, 0, %v1433_v20  ;;  %v481_v4 = vsel %vm396_vm5, %v480_v38, %v2231_v36  ;;  %v556_v48 = vadd.s32 1, %v2288_v52 }
  0xc7   : > { %v373_v44 = vmul.f32 %v372_v54, %v370_v12  ;;  %v466_v9 = vsub.s32 32, %v465_v3  ;;  %v467_v5 = vshll.u32 %v2250_v50, %v465_v3  ;;  %v470_v41 = vsub.s32 4294967266, %v465_v3 }
  0xc8   : > { %v617_v46 = vsub.s32 32, %v616_v16  ;;  %v2311_v15 = vand.u32 3, %v383_v58  ;;  %v557_v23 = vsel %vm555_vm9, %v556_v48, %v2288_v52  ;;  %v610_v18 = vor.u32 8388608, %v2299_v14 }
  0xc9   : > { %v374_v10 = vxor.u32 2147483648, %v373_v44  ;;  %v468_v47 = vshrl.u32 %v450_v1, %v466_v9  ;;  %v471_v19 = vadd.s32 127, %v470_v41  ;;  %v483_v21 = vsel %vm2293_vm6, 0, %v481_v4 }
  0xca   : > { %v558_v36 = vadd.s32 %v557_v23, %v553_v2  ;;  %v619_v50 = vshll.u32 %v1855_v53, %v616_v16  ;;  %v620_v22 = vshrl.u32 %v1856_v55, %v617_v46  ;;  %v622_v25 = vshll.u32 %v1856_v55, %v616_v16 }
  0xcb   : > { %v375_v27 = vsel %vm292_vm14, %v374_v10, %v373_v44  ;;  %v469_v28 = vor.u32 %v468_v47, %v467_v5  ;;  %v472_v30 = vshll.u32 %v471_v19, 23  ;;  %v623_v33 = vshrl.u32 %v1857_v57, %v617_v46 }
  0xcc   : > { %v378_v26 = vsel %vm2236_vm0, %v2073_v11, %v375_v27  ;;  %v559_v31 = vadd.s32 536870912, %v558_v36  ;;  %v625_v35 = vshll.u32 %v1857_v57, %v616_v16  ;;  %v626_v38 = vshrl.u32 %v1858_v59, %v617_v46 }
  0xcd   : > { %1606 = vcosq.f32 %v378_v26  ;;  %v473_v40 = vor.u32 4788187, %v472_v30  ;;  %v476_v39 = vcvt.s32.f32 %v469_v28  ;;  %vm389_vm10 = vcmp.eq.s32.totalorder %v2311_v15, 2 }
  0xce   : > { %1608 = vsinq.f32 %v378_v26  ;;  %v2328_v54 = vshrl.u32 %v559_v31, 30  ;;  %v615_v52 = vshrl.u32 %v614_v6, 5  ;;  %v628_v43 = vshll.u32 %v1858_v59, %v616_v16 }
  0xcf   : > { %v629_v20 = vshrl.u32 %v1859_v61, %v617_v46  ;;  %v631_v14 = vshll.u32 %v1859_v61, %v616_v16  ;;  %vm386_vm11 = vcmp.eq.s32.totalorder %v2311_v15, 0  ;;  %v474_v12 = vand.u32 2147483647, %v473_v40 }
  0xd0   : > { %v487_v58 = vadd.s32 3, %v483_v21  ;;  %v561_v1 = vshll.u32 %v2328_v54, 30  ;;  %v632_v2 = vshrl.u32 %v1860_v8, %v617_v46  ;;  %vm385_vm12 = vcmp.lt.s32.totalorder %v2311_v15, 2 }
  0xd1   : > { %v618_v44 = vshrl.u32 %v1855_v53, %v617_v46  ;;  %v621_v3 = vor.u32 %v620_v22, %v619_v50  ;;  %v624_v6 = vor.u32 %v623_v33, %v622_v25  ;;  %v630_v4 = vor.u32 %v629_v20, %v628_v43 }
  0xd2   : > { %vm382_vm13 = vweird.f32 %v2073_v11  ;;  %v477_v48 = vmul.f32 %v476_v39, %v474_v12  ;;  %v2340_v9 = vsub.s32 %v558_v36, %v561_v1  ;;  %v627_v16 = vor.u32 %v626_v38, %v625_v35 }
  0xd3   : > { %v633_v5 = vor.u32 %v632_v2, %v631_v14  ;;  %vm634_vm14 = vcmp.lt.s32.totalorder %v615_v52, 1  ;;  %vm637_vm15 = vcmp.lt.s32.totalorder %v615_v52, 4  ;;  %v2342_v41 = vshll.u32 %v610_v18, 8 }
  0xd4   : > { %v709_v10 = vand.u32 2139095040, %v2207_v29  ;;  %v478_v23 = vxor.u32 2147483648, %v477_v48  ;;  %v564_v47 = vsub.s32 0, %v2340_v9  ;;  %vm636_vm0 = vcmp.lt.s32.totalorder %v615_v52, 3 }
  0xd5   : > { %v639_v46 = vsel %vm637_vm15, %v627_v16, 2102212464  ;;  %vm2349_vm1 = vcmp.eq.s32.totalorder %v1132_v60, 1  ;;  %vm2356_vm2 = vcmp.eq.s32.totalorder %v1136_v62, 1  ;;  %vm500_vm3 = vcmp.lt.s32.totalorder %v2082_v17, 0 }
  0xd6   : > { %vm635_vm4 = vcmp.lt.s32.totalorder %v615_v52, 2  ;;  %v638_v21 = vsel %vm634_vm14, %v618_v44, %v621_v3  ;;  %v643_v36 = vsel %vm637_vm15, %v630_v4, 920167782  ;;  %v647_v27 = vsel %vm637_vm15, %v633_v5, 1326507024  ;;  %v2411_v5 = vld [vmem:[#allocation8 + $0x10] sm:$0xff] }
  0xd7   : > { %v479_v60 = vsel %vm396_vm5, %v478_v23, %v477_v48  ;;  %v1436_v50 = vmin.u32 %v564_v47, %v2340_v9  ;;  %v640_v22 = vsel %vm636_vm0, %v624_v6, %v639_v46  ;;  %v642_v42 = vsel %vm634_vm14, %v621_v3, %v624_v6  ;;  %v1607_v62 = vpop.eup %1606  ;;  %v2413_v23 = vld [vmem:[#allocation8 + $0x18] sm:$0xff] }
  0xd8   : > { %v482_v25 = vsel %vm2293_vm6, %v2076_v13, %v479_v60  ;;  %v644_v26 = vsel %vm636_vm0, %v627_v16, %v643_v36  ;;  %v646_v28 = vsel %vm634_vm14, %v624_v6, %v627_v16  ;;  %v648_v30 = vsel %vm636_vm0, %v630_v4, %v647_v27  ;;  %v1609_v31 = vpop.eup %1608  ;;  %v2400_v6 = vld [vmem:[#allocation8] sm:$0xff]  ;;  %v2409_v16 = vld [vmem:[#allocation8 + $0x8] sm:$0xff] }
  0xd9   : > { %v390_v33 = vxor.u32 2147483648, %v1607_v62  ;;  %1610 = vcosq.f32 %v482_v25  ;;  %v2374_v35 = vand.u32 3, %v487_v58  ;;  %v566_v38 = vclz %v1436_v50 }
  0xda   : > { %v387_v40 = vxor.u32 2147483648, %v1609_v31  ;;  %1612 = vsinq.f32 %v482_v25  ;;  %v584_v39 = vsub.s32 4, %v2328_v54  ;;  %v641_v56 = vsel %vm635_vm4, %v638_v21, %v640_v22 }
  0xdb   : > { %v391_v43 = vsel %vm389_vm10, %v390_v33, %v1609_v31  ;;  %v1437_v20 = vadd.s32 4294967294, %v566_v38  ;;  %v645_v14 = vsel %vm635_vm4, %v642_v42, %v644_v26  ;;  %v649_v12 = vsel %vm635_vm4, %v646_v28, %v648_v30 }
  0xdc   : > { %v388_v58 = vsel %vm386_vm11, %v1607_v62, %v387_v40  ;;  %vm2390_vm5 = vcmp.le.f32.partialorder %v498_v51, 0.7853982  ;;  %v2395_v2 = vmul.u32.u64.low %v2342_v41, %v649_v12  ;;  %v2396_v44 = vmul.u32.u64.high %v2342_v41, %v649_v12, %v2395_v2 }
  0xdd   : > { %v710_v3 = vshrl.u32 %v709_v10, 23  ;;  %v392_v52 = vsel %vm385_vm12, %v388_v58, %v391_v43  ;;  %vm1438_vm6 = vcmp.lt.s32.totalorder %v1437_v20, 0  ;;  %vm486_vm7 = vweird.f32 %v2076_v13 }
  0xde   : > { %v2403_v4 = vmul.u32.u64.low %v2342_v41, %v645_v14  ;;  %v2404_v48 = vmul.u32.u64.high %v2342_v41, %v645_v14, %v2403_v4  ;;  %v393_v51 = vsel %vm382_vm13, nan, %v392_v52  ;;  %v554_v15 = vadd.s32 %v2287_v49, %v2279_v32 }
  0xdf   : > { %v569_v10 = vsel %vm1438_vm6, 0, %v1437_v20  ;;  %v1443_v47 = vadd.s32 4294967169, %v710_v3  ;;  %v1150_v46 = vrot.slane %v393_v51, %v2097_v34  ;;  %v1154_v21 = vrot.slane %v393_v51, %v2099_v37 }
  0xe0   : > { %v570_v11 = vsub.s32 32, %v569_v10  ;;  %v585_v36 = vsel %vm500_vm3, %v584_v39, %v2328_v54  ;;  %v571_v27 = vshll.u32 %v2340_v9, %v569_v10  ;;  %v574_v60 = vsub.s32 4294967266, %v569_v10 }
  0xe1   : > { %v657_v50 = vmul.u32 %v2342_v41, %v641_v56  ;;  %vm659_vm8 = vc.u32 %v2396_v44, %v2403_v4  ;;  %v1227_v32 = vsel %vm2349_vm1, %v1150_v46, %v2400_v6  ;;  %v1228_v49 = vsel %vm2356_vm2, %v1154_v21, %v2409_v16 }
  0xe2   : > { %v1229_v54 = vsel %vm2349_vm1, %v1150_v46, %v2411_v5  ;;  %v1230_v9 = vsel %vm2356_vm2, %v1154_v21, %v2413_v23  ;;  %1259 = vst [vmem:[%s2440_s21] sm:$0xff] %v1227_v32  ;;  %1260 = vst [vmem:[%s2440_s21 + $0x8] sm:$0xff] %v1228_v49  ;;  %v572_v41 = vshrl.u32 %v554_v15, %v570_v11  ;;  %v575_v22 = vadd.s32 127, %v574_v60 }
  0xe3   : > { %1261 = vst [vmem:[%s2440_s21 + $0x10] sm:$0xff] %v1229_v54  ;;  %1262 = vst [vmem:[%s2440_s21 + $0x18] sm:$0xff] %v1230_v9  ;;  %v660_v42 = vadd.s32 1, %v2404_v48  ;;  %v716_v62 = vadd.s32 1, %v1443_v47  ;;  %v1611_v25 = vpop.eup %1610  ;;  %vm489_vm9 = vcmp.lt.s32.totalorder %v2374_v35, 2  ;;  %vm490_vm10 = vcmp.eq.s32.totalorder %v2374_v35, 0 }
  0xe4   : > { %vm493_vm11 = vcmp.eq.s32.totalorder %v2374_v35, 2  ;;  %v706_v26 = vand.u32 2147483647, %v2207_v29  ;;  %v1613_v28 = vpop.eup %1612  ;;  %v494_v30 = vxor.u32 2147483648, %v1611_v25  ;;  %v573_v31 = vor.u32 %v572_v41, %v571_v27 }
  0xe5   : > { %v576_v33 = vshll.u32 %v575_v22, 23  ;;  %v661_v38 = vsel %vm659_vm8, %v660_v42, %v2404_v48  ;;  %v491_v40 = vxor.u32 2147483648, %v1613_v28  ;;  %v587_v39 = vsel %vm2390_vm5, 0, %v585_v36 }
  0xe6   : > { %v662_v56 = vadd.s32 %v661_v38, %v657_v50  ;;  %vm717_vm12 = vcmp.gt.s32.totalorder %v716_v62, 0  ;;  %v495_v43 = vsel %vm493_vm11, %v494_v30, %v1613_v28  ;;  %v580_v14 = vcvt.s32.f32 %v573_v31 }
  0xe7   : > { %v577_v20 = vor.u32 4788187, %v576_v33  ;;  %v718_v12 = vsel %vm717_vm12, %v716_v62, 0  ;;  %v492_v58 = vsel %vm490_vm10, %v1611_v25, %v491_v40  ;;  %v591_v48 = vadd.s32 3, %v587_v39 }
  0xe8   : > { %v663_v2 = vadd.s32 536870912, %v662_v56  ;;  %v720_v3 = vand.u32 31, %v718_v12  ;;  %v496_v52 = vsel %vm489_vm9, %v492_v58, %v495_v43  ;;  %v2462_v15 = vadd.s32 6, %v2060_v0 }
  0xe9   : > { %v578_v51 = vand.u32 2147483647, %v577_v20  ;;  %v497_v10 = vsel %vm486_vm7, nan, %v496_v52  ;;  %v713_v46 = vand.u32 8388607, %v706_v26  ;;  %v2474_v27 = vadd.f32 %v2067_v7, %v2195_v45 }
  0xea   : > { %v2466_v47 = vshrl.u32 %v663_v2, 30  ;;  %v721_v21 = vsub.s32 32, %v720_v3  ;;  %v1158_v35 = vrot.slane %v497_v10, %v2097_v34  ;;  %v1162_v11 = vrot.slane %v497_v10, %v2099_v37 }
  0xeb   : > { %v581_v36 = vmul.f32 %v580_v14, %v578_v51  ;;  %v723_v60 = vshll.u32 %v1855_v53, %v720_v3  ;;  %v726_v32 = vshll.u32 %v1856_v55, %v720_v3  ;;  %v2496_v41 = vand.u32 3, %v591_v48 }
  0xec   : > { %v665_v13 = vshll.u32 %v2466_v47, 30  ;;  %v724_v50 = vshrl.u32 %v1856_v55, %v721_v21  ;;  %v1231_v49 = vsel %vm2349_vm1, %v1158_v35, %v2400_v6  ;;  %v1232_v54 = vsel %vm2356_vm2, %v1162_v11, %v2409_v16 }
  0xed   : > { %v1233_v7 = vsel %vm2349_vm1, %v1158_v35, %v2411_v5  ;;  %v1234_v45 = vsel %vm2356_vm2, %v1162_v11, %v2413_v23  ;;  %1263 = vst [vmem:[%s2440_s21 + $0x20] sm:$0xff] %v1231_v49  ;;  %1264 = vst [vmem:[%s2440_s21 + $0x28] sm:$0xff] %v1232_v54  ;;  %v582_v9 = vxor.u32 2147483648, %v581_v36  ;;  %v714_v42 = vor.u32 8388608, %v713_v46 }
  0xee   : > { %1265 = vst [vmem:[%s2440_s21 + $0x30] sm:$0xff] %v1233_v7  ;;  %1266 = vst [vmem:[%s2440_s21 + $0x38] sm:$0xff] %v1234_v45  ;;  %v2498_v22 = vsub.s32 %v662_v56, %v665_v13  ;;  %v719_v62 = vshrl.u32 %v718_v12, 5  ;;  %v727_v25 = vshrl.u32 %v1857_v57, %v721_v21  ;;  %v729_v28 = vshll.u32 %v1857_v57, %v720_v3 }
  0xef   : > { %v730_v30 = vshrl.u32 %v1858_v59, %v721_v21  ;;  %v583_v31 = vsel %vm500_vm3, %v582_v9, %v581_v36  ;;  %v722_v38 = vshrl.u32 %v1855_v53, %v721_v21  ;;  %v732_v40 = vshll.u32 %v1858_v59, %v720_v3 }
  0xf0   : > { %v668_v33 = vsub.s32 0, %v2498_v22  ;;  %v586_v39 = vsel %vm2390_vm5, %v2082_v17, %v583_v31  ;;  %v725_v56 = vor.u32 %v724_v50, %v723_v60  ;;  %v728_v43 = vor.u32 %v727_v25, %v726_v32 }
  0xf1   : > { %v733_v20 = vshrl.u32 %v1859_v61, %v721_v21  ;;  %1614 = vcosq.f32 %v586_v39  ;;  %v731_v12 = vor.u32 %v730_v30, %v729_v28  ;;  %v735_v58 = vshll.u32 %v1859_v61, %v720_v3 }
  0xf2   : > { %v1440_v14 = vmin.u32 %v668_v33, %v2498_v22  ;;  %1616 = vsinq.f32 %v586_v39  ;;  %vm604_vm13 = vcmp.lt.s32.totalorder %v2188_v63, 0  ;;  %v736_v52 = vshrl.u32 %v1860_v8, %v721_v21 }
  0xf3   : > { %v734_v2 = vor.u32 %v733_v20, %v732_v40  ;;  %vm738_vm14 = vcmp.lt.s32.totalorder %v719_v62, 1  ;;  %vm597_vm15 = vcmp.eq.s32.totalorder %v2496_v41, 2  ;;  %v658_v1 = vadd.s32 %v2403_v4, %v2396_v44 }
  0xf4   : > { %v670_v51 = vclz %v1440_v14  ;;  %v754_v48 = vshll.u32 %v714_v42, 8  ;;  %v813_v10 = vand.u32 2139095040, %v2474_v27  ;;  %v737_v46 = vor.u32 %v736_v52, %v735_v58 }
  0xf5   : > { %vm739_vm0 = vcmp.lt.s32.totalorder %v719_v62, 2  ;;  %vm740_vm3 = vcmp.lt.s32.totalorder %v719_v62, 3  ;;  %vm741_vm4 = vcmp.lt.s32.totalorder %v719_v62, 4  ;;  %vm593_vm5 = vcmp.lt.s32.totalorder %v2496_v41, 2 }
  0xf6   : > { %vm2523_vm6 = vcmp.le.f32.partialorder %v602_v24, 0.7853982  ;;  %v1441_v21 = vadd.s32 4294967294, %v670_v51  ;;  %v742_v35 = vsel %vm738_vm14, %v722_v38, %v725_v56  ;;  %v743_v44 = vsel %vm741_vm4, %v731_v12, 2102212464 }
  0xf7   : > { %v746_v4 = vsel %vm738_vm14, %v725_v56, %v728_v43  ;;  %vm590_vm7 = vweird.f32 %v2082_v17  ;;  %v744_v11 = vsel %vm740_vm3, %v728_v43, %v743_v44  ;;  %v747_v36 = vsel %vm741_vm4, %v734_v2, 920167782 }
  0xf8   : > { %v750_v13 = vsel %vm738_vm14, %v728_v43, %v731_v12  ;;  %v751_v60 = vsel %vm741_vm4, %v737_v46, 1326507024  ;;  %vm1442_vm8 = vcmp.lt.s32.totalorder %v1441_v21, 0  ;;  %v688_v24 = vsub.s32 4, %v2466_v47 }
  0xf9   : > { %v748_v50 = vsel %vm740_vm3, %v731_v12, %v747_v36  ;;  %v752_v32 = vsel %vm740_vm3, %v734_v2, %v751_v60  ;;  %v673_v49 = vsel %vm1442_vm8, 0, %v1441_v21  ;;  %v745_v54 = vsel %vm739_vm0, %v742_v35, %v744_v11 }
  0xfa   : > { %v749_v7 = vsel %vm739_vm0, %v746_v4, %v748_v50  ;;  %v753_v45 = vsel %vm739_vm0, %v750_v13, %v752_v32  ;;  %v674_v9 = vsub.s32 32, %v673_v49  ;;  %v675_v42 = vshll.u32 %v2498_v22, %v673_v49 }
  0xfb   : > { %v678_v25 = vsub.s32 4294967266, %v673_v49  ;;  %v814_v28 = vshrl.u32 %v813_v10, 23  ;;  %v2539_v30 = vmul.u32.u64.low %v754_v48, %v753_v45  ;;  %v2540_v31 = vmul.u32.u64.high %v754_v48, %v753_v45, %v2539_v30  ;;  %v1615_v40 = vpop.eup %1614 }
  0xfc   : > { %v2542_v33 = vmul.u32.u64.low %v754_v48, %v749_v7  ;;  %v2543_v38 = vmul.u32.u64.high %v754_v48, %v749_v7, %v2542_v33  ;;  %v676_v39 = vshrl.u32 %v658_v1, %v674_v9  ;;  %v689_v62 = vsel %vm604_vm13, %v688_v24, %v2466_v47  ;;  %v1617_v20 = vpop.eup %1616 }
  0xfd   : > { %v679_v56 = vadd.s32 127, %v678_v25  ;;  %v1447_v43 = vadd.s32 4294967169, %v814_v28  ;;  %vm594_vm9 = vcmp.eq.s32.totalorder %v2496_v41, 0  ;;  %v598_v22 = vxor.u32 2147483648, %v1615_v40 }
  0xfe   : > { %v761_v14 = vmul.u32 %v754_v48, %v745_v54  ;;  %v810_v12 = vand.u32 2147483647, %v2474_v27  ;;  %v595_v58 = vxor.u32 2147483648, %v1617_v20  ;;  %v677_v2 = vor.u32 %v676_v39, %v675_v42 }
  0xff   : > { %v680_v52 = vshll.u32 %v679_v56, 23  ;;  %v820_v51 = vadd.s32 1, %v1447_v43  ;;  %v599_v1 = vsel %vm597_vm15, %v598_v22, %v1617_v20  ;;  %v691_v10 = vsel %vm2523_vm6, 0, %v689_v62 }
 0x100   : > { %vm763_vm10 = vc.u32 %v2540_v31, %v2542_v33  ;;  %v764_v47 = vadd.s32 1, %v2543_v38  ;;  %v596_v46 = vsel %vm594_vm9, %v1615_v40, %v595_v58  ;;  %v684_v48 = vcvt.s32.f32 %v677_v2 }
 0x101   : > { %v681_v21 = vor.u32 4788187, %v680_v52  ;;  %vm821_vm11 = vcmp.gt.s32.totalorder %v820_v51, 0  ;;  %v600_v35 = vsel %vm593_vm5, %v596_v46, %v599_v1  ;;  %v695_v13 = vadd.s32 3, %v691_v10  ;;  %v2604_v10 = vld [vmem:[#allocation2] sm:$0x3] }
 0x102   : > { %v765_v44 = vsel %vm763_vm10, %v764_v47, %v2543_v38  ;;  %v822_v4 = vsel %vm821_vm11, %v820_v51, 0  ;;  %v601_v11 = vsel %vm590_vm7, nan, %v600_v35  ;;  %v817_v41 = vand.u32 8388607, %v810_v12 }
 0x103   : > { %v682_v36 = vand.u32 2147483647, %v681_v21  ;;  %v766_v60 = vadd.s32 %v765_v44, %v761_v14  ;;  %v1166_v24 = vrot.slane %v601_v11, %v2097_v34  ;;  %v1170_v50 = vrot.slane %v601_v11, %v2099_v37 }
 0x104   : > { %v824_v32 = vand.u32 31, %v822_v4  ;;  %v270_v17 = vcvt.s32.f32 %v2462_v15  ;;  %v2584_v25 = vand.u32 3, %v695_v13  ;;  %v818_v38 = vor.u32 8388608, %v817_v41 }
 0x105   : > { %v685_v49 = vmul.f32 %v684_v48, %v682_v36  ;;  %v767_v54 = vadd.s32 536870912, %v766_v60  ;;  %v1235_v7 = vsel %vm2349_vm1, %v1166_v24, %v2400_v6  ;;  %v1236_v45 = vsel %vm2356_vm2, %v1170_v50, %v2409_v16 }
 0x106   : > { %v1237_v9 = vsel %vm2349_vm1, %v1166_v24, %v2411_v5  ;;  %v1238_v42 = vsel %vm2356_vm2, %v1170_v50, %v2413_v23  ;;  %1267 = vst [vmem:[%s2440_s21 + $0x40] sm:$0xff] %v1235_v7  ;;  %1268 = vst [vmem:[%s2440_s21 + $0x48] sm:$0xff] %v1236_v45  ;;  %v825_v30 = vsub.s32 32, %v824_v32  ;;  %v823_v40 = vshrl.u32 %v822_v4, 5 }
 0x107   : > { %1269 = vst [vmem:[%s2440_s21 + $0x50] sm:$0xff] %v1237_v9  ;;  %1270 = vst [vmem:[%s2440_s21 + $0x58] sm:$0xff] %v1238_v42  ;;  %v686_v15 = vxor.u32 2147483648, %v685_v49  ;;  %v2586_v28 = vshrl.u32 %v767_v54, 30  ;;  %v827_v39 = vshll.u32 %v1855_v53, %v824_v32  ;;  %v830_v56 = vshll.u32 %v1856_v55, %v824_v32  ;;  %v2620_v54 = vld [vmem:[#allocation5] sm:$0x3] }
 0x108   : > { %v833_v20 = vshll.u32 %v1857_v57, %v824_v32  ;;  %v836_v22 = vshll.u32 %v1858_v59, %v824_v32  ;;  %v828_v58 = vshrl.u32 %v1856_v55, %v825_v30  ;;  %v831_v2 = vshrl.u32 %v1857_v57, %v825_v30 }
 0x109   : > { %v687_v62 = vsel %vm604_vm13, %v686_v15, %v685_v49  ;;  %v769_v43 = vshll.u32 %v2586_v28, 30  ;;  %v834_v52 = vshrl.u32 %v1858_v59, %v825_v30  ;;  %v837_v1 = vshrl.u32 %v1859_v61, %v825_v30 }
 0x10a   : > { %v690_v14 = vsel %vm2523_vm6, %v2188_v63, %v687_v62  ;;  %v279_v47 = vmul.f32 %v2604_v10, %v270_v17  ;;  %v829_v46 = vor.u32 %v828_v58, %v827_v39  ;;  %v832_v21 = vor.u32 %v831_v2, %v830_v56 }
 0x10b   : > { %1618 = vcosq.f32 %v690_v14  ;;  %v2601_v51 = vsub.s32 %v766_v60, %v769_v43  ;;  %v839_v3 = vshll.u32 %v1859_v61, %v824_v32  ;;  %v835_v35 = vor.u32 %v834_v52, %v833_v20 }
 0x10c   : > { %1620 = vsinq.f32 %v690_v14  ;;  %v838_v44 = vor.u32 %v837_v1, %v836_v22  ;;  %vm842_vm12 = vcmp.lt.s32.totalorder %v823_v40, 1  ;;  %v826_v4 = vshrl.u32 %v1855_v53, %v825_v30 }
 0x10d   : > { %v772_v48 = vsub.s32 0, %v2601_v51  ;;  %v840_v11 = vshrl.u32 %v1860_v8, %v825_v30  ;;  %vm845_vm13 = vcmp.lt.s32.totalorder %v823_v40, 4  ;;  %vm697_vm14 = vcmp.lt.s32.totalorder %v2584_v25, 2 }
 0x10e   : > { %vm844_vm15 = vcmp.lt.s32.totalorder %v823_v40, 3  ;;  %v847_v13 = vsel %vm845_vm13, %v835_v35, 2102212464  ;;  %v858_v60 = vshll.u32 %v818_v38, 8  ;;  %vm694_vm0 = vweird.f32 %v2188_v63 }
 0x10f   : > { %v1444_v36 = vmin.u32 %v772_v48, %v2601_v51  ;;  %vm708_vm3 = vcmp.lt.s32.totalorder %v2207_v29, 0  ;;  %v841_v24 = vor.u32 %v840_v11, %v839_v3  ;;  %vm843_vm4 = vcmp.lt.s32.totalorder %v823_v40, 2 }
 0x110   : > { %v850_v50 = vsel %vm842_vm12, %v829_v46, %v832_v21  ;;  %v851_v41 = vsel %vm845_vm13, %v838_v44, 920167782  ;;  %vm701_vm5 = vcmp.eq.s32.totalorder %v2584_v25, 2  ;;  %v854_v49 = vsel %vm842_vm12, %v832_v21, %v835_v35 }
 0x111   : > { %v774_v32 = vclz %v1444_v36  ;;  %v2623_v17 = vadd.f32 %v2620_v54, %v279_v47  ;;  %v846_v7 = vsel %vm842_vm12, %v826_v4, %v829_v46  ;;  %v848_v45 = vsel %vm844_vm15, %v832_v21, %v847_v13 }
 0x112   : > { %v852_v9 = vsel %vm844_vm15, %v835_v35, %v851_v41  ;;  %v855_v42 = vsel %vm845_vm13, %v841_v24, 1326507024  ;;  %v762_v15 = vadd.s32 %v2542_v33, %v2540_v31  ;;  %vm2635_vm6 = vcmp.le.f32.partialorder %v706_v26, 0.7853982 }
 0x113   : > { %v1445_v30 = vadd.s32 4294967294, %v774_v32  ;;  %v853_v38 = vsel %vm843_vm4, %v850_v50, %v852_v9  ;;  %v856_v39 = vsel %vm844_vm15, %v838_v44, %v855_v42  ;;  %v792_v62 = vsub.s32 4, %v2586_v28 }
 0x114   : > { %v857_v43 = vsel %vm843_vm4, %v854_v49, %v856_v39  ;;  %v2641_v20 = vmul.u32.u64.low %v858_v60, %v853_v38  ;;  %v2642_v22 = vmul.u32.u64.high %v858_v60, %v853_v38, %v2641_v20  ;;  %v849_v33 = vsel %vm843_vm4, %v846_v7, %v848_v45 }
 0x115   : > { %v1619_v31 = vpop.eup %1618  ;;  %vm1446_vm7 = vcmp.lt.s32.totalorder %v1445_v30, 0  ;;  %v2646_v14 = vmul.u32.u64.low %v858_v60, %v857_v43  ;;  %v2647_v58 = vmul.u32.u64.high %v858_v60, %v857_v43, %v2646_v14  ;;  %vm698_vm8 = vcmp.eq.s32.totalorder %v2584_v25, 0 }
 0x116   : > { %v1621_v2 = vpop.eup %1620  ;;  %v702_v26 = vxor.u32 2147483648, %v1619_v31  ;;  %v777_v52 = vsel %vm1446_vm7, 0, %v1445_v30  ;;  %v917_v1 = vand.u32 2139095040, %v2623_v17  ;;  %v865_v40 = vmul.u32 %v858_v60, %v849_v33 }
 0x117   : > { %v699_v47 = vxor.u32 2147483648, %v1621_v2  ;;  %v778_v46 = vsub.s32 32, %v777_v52  ;;  %v779_v21 = vshll.u32 %v2601_v51, %v777_v52  ;;  %v782_v3 = vsub.s32 4294967266, %v777_v52 }
 0x118   : > { %v703_v48 = vsel %vm701_vm5, %v702_v26, %v1621_v2  ;;  %v868_v35 = vadd.s32 1, %v2642_v22  ;;  %v918_v44 = vshrl.u32 %v917_v1, 23  ;;  %v793_v13 = vsel %vm708_vm3, %v792_v62, %v2586_v28 }
 0x119   : > { %v700_v4 = vsel %vm698_vm8, %v1619_v31, %v699_v47  ;;  %v780_v11 = vshrl.u32 %v762_v15, %v778_v46  ;;  %v783_v36 = vadd.s32 127, %v782_v3  ;;  %vm867_vm9 = vc.u32 %v2647_v58, %v2641_v20 }
 0x11a   : > { %v704_v24 = vsel %vm697_vm14, %v700_v4, %v703_v48  ;;  %v914_v51 = vand.u32 2147483647, %v2623_v17  ;;  %v1451_v50 = vadd.s32 4294967169, %v918_v44  ;;  %v869_v28 = vsel %vm867_vm9, %v868_v35, %v2642_v22 }
 0x11b   : > { %v705_v60 = vsel %vm694_vm0, nan, %v704_v24  ;;  %v781_v41 = vor.u32 %v780_v11, %v779_v21  ;;  %v784_v32 = vshll.u32 %v783_v36, 23  ;;  %v870_v7 = vadd.s32 %v869_v28, %v865_v40 }
 0x11c   : > { %v1174_v25 = vrot.slane %v705_v60, %v2097_v34  ;;  %v1178_v49 = vrot.slane %v705_v60, %v2099_v37  ;;  %v924_v45 = vadd.s32 1, %v1451_v50  ;;  %v795_v63 = vsel %vm2635_vm6, 0, %v793_v13 }
 0x11d   : > { %v785_v9 = vor.u32 4788187, %v784_v32  ;;  %v788_v42 = vcvt.s32.f32 %v781_v41  ;;  %v871_v43 = vadd.s32 536870912, %v870_v7  ;;  %v799_v22 = vadd.s32 3, %v795_v63 }
 0x11e   : > { %v1239_v15 = vsel %vm2349_vm1, %v1174_v25, %v2400_v6  ;;  %v1240_v30 = vsel %vm2356_vm2, %v1178_v49, %v2409_v16  ;;  %v1241_v38 = vsel %vm2349_vm1, %v1174_v25, %v2411_v5  ;;  %v1242_v39 = vsel %vm2356_vm2, %v1178_v49, %v2413_v23 }
 0x11f   : > { %1271 = vst [vmem:[%s2440_s21 + $0x60] sm:$0xff] %v1239_v15  ;;  %1272 = vst [vmem:[%s2440_s21 + $0x68] sm:$0xff] %v1240_v30  ;;  %v786_v62 = vand.u32 2147483647, %v785_v9  ;;  %vm925_vm10 = vcmp.gt.s32.totalorder %v924_v45, 0  ;;  %v2688_v2 = vshrl.u32 %v871_v43, 30  ;;  %v866_v32 = vadd.s32 %v2641_v20, %v2647_v58 }
 0x120   : > { %1273 = vst [vmem:[%s2440_s21 + $0x70] sm:$0xff] %v1241_v38  ;;  %1274 = vst [vmem:[%s2440_s21 + $0x78] sm:$0xff] %v1242_v39  ;;  %v921_v31 = vand.u32 8388607, %v914_v51  ;;  %v926_v33 = vsel %vm925_vm10, %v924_v45, 0  ;;  %v263_v46 = vadd.s32 7, %v2060_v0  ;;  %vm798_vm15 = vweird.f32 %v2207_v29 }
 0x121   : > { %v789_v14 = vmul.f32 %v788_v42, %v786_v62  ;;  %v928_v26 = vand.u32 31, %v926_v33  ;;  %v873_v1 = vshll.u32 %v2688_v2, 30  ;;  %v2692_v21 = vand.u32 3, %v799_v22 }
 0x122   : > { %v922_v3 = vor.u32 8388608, %v921_v31  ;;  %v927_v48 = vshrl.u32 %v926_v33, 5  ;;  %v271_v41 = vcvt.s32.f32 %v263_v46  ;;  %vm812_vm4 = vcmp.lt.s32.totalorder %v2474_v27, 0 }
 0x123   : > { %v790_v52 = vxor.u32 2147483648, %v789_v14  ;;  %v929_v47 = vsub.s32 32, %v928_v26  ;;  %v931_v40 = vshll.u32 %v1855_v53, %v928_v26  ;;  %v2697_v44 = vsub.s32 %v870_v7, %v873_v1 }
 0x124   : > { %v934_v4 = vshll.u32 %v1856_v55, %v928_v26  ;;  %v937_v11 = vshll.u32 %v1857_v57, %v928_v26  ;;  %v940_v24 = vshll.u32 %v1858_v59, %v928_v26  ;;  %vm805_vm11 = vcmp.eq.s32.totalorder %v2692_v21, 2 }
 0x125   : > { %v791_v35 = vsel %vm708_vm3, %v790_v52, %v789_v14  ;;  %v932_v0 = vshrl.u32 %v1856_v55, %v929_v47  ;;  %v935_v13 = vshrl.u32 %v1857_v57, %v929_v47  ;;  %v876_v50 = vsub.s32 0, %v2697_v44 }
 0x126   : > { %v794_v36 = vsel %vm2635_vm6, %v2207_v29, %v791_v35  ;;  %v938_v60 = vshrl.u32 %v1858_v59, %v929_v47  ;;  %v930_v28 = vshrl.u32 %v1855_v53, %v929_v47  ;;  %v941_v56 = vshrl.u32 %v1859_v61, %v929_v47 }
 0x127   : > { %1622 = vcosq.f32 %v794_v36  ;;  %v1448_v25 = vmin.u32 %v876_v50, %v2697_v44  ;;  %v933_v49 = vor.u32 %v932_v0, %v931_v40  ;;  %v936_v7 = vor.u32 %v935_v13, %v934_v4 }
 0x128   : > { %1624 = vsinq.f32 %v794_v36  ;;  %v943_v45 = vshll.u32 %v1859_v61, %v928_v26  ;;  %vm802_vm12 = vcmp.eq.s32.totalorder %v2692_v21, 0  ;;  %v939_v9 = vor.u32 %v938_v60, %v937_v11 }
 0x129   : > { %v942_v42 = vor.u32 %v941_v56, %v940_v24  ;;  %v944_v63 = vshrl.u32 %v1860_v8, %v929_v47  ;;  %vm946_vm13 = vcmp.lt.s32.totalorder %v927_v48, 1  ;;  %v878_v20 = vclz %v1448_v25 }
 0x12a   : > { %vm947_vm14 = vcmp.lt.s32.totalorder %v927_v48, 2  ;;  %v962_v58 = vshll.u32 %v922_v3, 8  ;;  %v280_v15 = vmul.f32 %v2604_v10, %v271_v41  ;;  %vm948_vm0 = vcmp.lt.s32.totalorder %v927_v48, 3 }
 0x12b   : > { %v945_v30 = vor.u32 %v944_v63, %v943_v45  ;;  %vm949_vm3 = vcmp.lt.s32.totalorder %v927_v48, 4  ;;  %v950_v38 = vsel %vm946_vm13, %v930_v28, %v933_v49  ;;  %v1449_v39 = vadd.s32 4294967294, %v878_v20 }
 0x12c   : > { %v951_v62 = vsel %vm949_vm3, %v939_v9, 2102212464  ;;  %v954_v43 = vsel %vm946_vm13, %v933_v49, %v936_v7  ;;  %v955_v22 = vsel %vm949_vm3, %v942_v42, 920167782  ;;  %v958_v14 = vsel %vm946_vm13, %v936_v7, %v939_v9 }
 0x12d   : > { %v952_v31 = vsel %vm948_vm0, %v936_v7, %v951_v62  ;;  %v956_v33 = vsel %vm948_vm0, %v939_v9, %v955_v22  ;;  %v959_v26 = vsel %vm949_vm3, %v945_v30, 1326507024  ;;  %vm1450_vm5 = vcmp.lt.s32.totalorder %v1449_v39, 0 }
 0x12e   : > { %v957_v10 = vsel %vm947_vm14, %v954_v43, %v956_v33  ;;  %v960_v52 = vsel %vm948_vm0, %v942_v42, %v959_v26  ;;  %v2726_v1 = vadd.f32 %v2620_v54, %v280_v15  ;;  %v881_v47 = vsel %vm1450_vm5, 0, %v1449_v39 }
 0x12f   : > { %v961_v46 = vsel %vm947_vm14, %v958_v14, %v960_v52  ;;  %v2729_v3 = vmul.u32.u64.low %v962_v58, %v957_v10  ;;  %v2730_v40 = vmul.u32.u64.high %v962_v58, %v957_v10, %v2729_v3  ;;  %v882_v4 = vsub.s32 32, %v881_v47 }
 0x130   : > { %v883_v11 = vshll.u32 %v2697_v44, %v881_v47  ;;  %v886_v36 = vsub.s32 4294967266, %v881_v47  ;;  %v953_v0 = vsel %vm947_vm14, %v950_v38, %v952_v31  ;;  %v896_v50 = vsub.s32 4, %v2688_v2 }
 0x131   : > { %v1623_v35 = vpop.eup %1622  ;;  %v2736_v54 = vmul.u32.u64.low %v962_v58, %v961_v46  ;;  %v2737_v60 = vmul.u32.u64.high %v962_v58, %v961_v46, %v2736_v54  ;;  %vm801_vm6 = vcmp.lt.s32.totalorder %v2692_v21, 2  ;;  %v884_v28 = vshrl.u32 %v866_v32, %v882_v4 }
 0x132   : > { %v1625_v13 = vpop.eup %1624  ;;  %v806_v24 = vxor.u32 2147483648, %v1623_v35  ;;  %v887_v56 = vadd.s32 127, %v886_v36  ;;  %v969_v49 = vmul.u32 %v962_v58, %v953_v0  ;;  %v972_v44 = vadd.s32 1, %v2730_v40 }
 0x133   : > { %v803_v41 = vxor.u32 2147483648, %v1625_v13  ;;  %v1021_v48 = vand.u32 2139095040, %v2726_v1  ;;  %vm2748_vm7 = vcmp.le.f32.partialorder %v810_v12, 0.7853982  ;;  %v885_v9 = vor.u32 %v884_v28, %v883_v11 }
 0x134   : > { %v807_v25 = vsel %vm805_vm11, %v806_v24, %v1625_v13  ;;  %v888_v32 = vshll.u32 %v887_v56, 23  ;;  %v897_v63 = vsel %vm812_vm4, %v896_v50, %v2688_v2  ;;  %vm971_vm8 = vc.u32 %v2737_v60, %v2729_v3 }
 0x135   : > { %v804_v7 = vsel %vm802_vm12, %v1623_v35, %v803_v41  ;;  %v1022_v20 = vshrl.u32 %v1021_v48, 23  ;;  %v892_v58 = vcvt.s32.f32 %v885_v9  ;;  %v973_v15 = vsel %vm971_vm8, %v972_v44, %v2730_v40 }
 0x136   : > { %v808_v42 = vsel %vm801_vm6, %v804_v7, %v807_v25  ;;  %v889_v12 = vor.u32 4788187, %v888_v32  ;;  %v974_v2 = vadd.s32 %v973_v15, %v969_v49  ;;  %v899_v43 = vsel %vm2748_vm7, 0, %v897_v63 }
 0x137   : > { %v809_v21 = vsel %vm798_vm15, nan, %v808_v42  ;;  %v1455_v39 = vadd.s32 4294967169, %v1022_v20  ;;  %v903_v52 = vadd.s32 3, %v899_v43  ;;  %v1018_v40 = vand.u32 2147483647, %v2726_v1 }
 0x138   : > { %v1182_v30 = vrot.slane %v809_v21, %v2097_v34  ;;  %v1186_v38 = vrot.slane %v809_v21, %v2099_v37  ;;  %v890_v62 = vand.u32 2147483647, %v889_v12  ;;  %v975_v26 = vadd.s32 536870912, %v974_v2 }
 0x139   : > { %v1028_v10 = vadd.s32 1, %v1455_v39  ;;  %v2789_v0 = vand.u32 3, %v903_v52  ;;  %v1025_v50 = vand.u32 8388607, %v1018_v40  ;;  %vm902_vm12 = vweird.f32 %v2474_v27 }
 0x13a   : > { %v1243_v29 = vsel %vm2349_vm1, %v1182_v30, %v2400_v6  ;;  %v1244_v22 = vsel %vm2356_vm2, %v1186_v38, %v2409_v16  ;;  %v1245_v31 = vsel %vm2349_vm1, %v1182_v30, %v2411_v5  ;;  %v1246_v33 = vsel %vm2356_vm2, %v1186_v38, %v2413_v23 }
 0x13b   : > { %1275 = vst [vmem:[%s2440_s21 + $0x80] sm:$0xff] %v1243_v29  ;;  %1276 = vst [vmem:[%s2440_s21 + $0x88] sm:$0xff] %v1244_v22  ;;  %v893_v14 = vmul.f32 %v892_v58, %v890_v62  ;;  %v2780_v46 = vshrl.u32 %v975_v26, 30  ;;  %vm1029_vm9 = vcmp.gt.s32.totalorder %v1028_v10, 0  ;;  %vm906_vm10 = vcmp.eq.s32.totalorder %v2789_v0, 0 }
 0x13c   : > { %1277 = vst [vmem:[%s2440_s21 + $0x90] sm:$0xff] %v1245_v31  ;;  %1278 = vst [vmem:[%s2440_s21 + $0x98] sm:$0xff] %v1246_v33  ;;  %v1030_v35 = vsel %vm1029_vm9, %v1028_v10, 0  ;;  %vm905_vm11 = vcmp.lt.s32.totalorder %v2789_v0, 2  ;;  %v1026_v9 = vor.u32 8388608, %v1025_v50  ;;  %vm909_vm14 = vcmp.eq.s32.totalorder %v2789_v0, 2 }
 0x13d   : > { %v894_v47 = vxor.u32 2147483648, %v893_v14  ;;  %v977_v11 = vshll.u32 %v2780_v46, 30  ;;  %v1032_v13 = vand.u32 31, %v1030_v35  ;;  %v1031_v54 = vshrl.u32 %v1030_v35, 5 }
 0x13e   : > { %v970_v58 = vadd.s32 %v2729_v3, %v2737_v60  ;;  %v1066_v62 = vshll.u32 %v1026_v9, 8  ;;  %vm916_vm6 = vcmp.lt.s32.totalorder %v2623_v17, 0 }
 0x13f   : > { %v895_v4 = vsel %vm812_vm4, %v894_v47, %v893_v14  ;;  %v2791_v24 = vsub.s32 %v974_v2, %v977_v11  ;;  %v1033_v41 = vsub.s32 32, %v1032_v13  ;;  %v1035_v28 = vshll.u32 %v1855_v53, %v1032_v13 }
 0x140   : > { %v898_v36 = vsel %vm2748_vm7, %v2474_v27, %v895_v4  ;;  %v1038_v25 = vshll.u32 %v1856_v55, %v1032_v13  ;;  %v1041_v49 = vshll.u32 %v1857_v57, %v1032_v13  ;;  %v1044_v32 = vshll.u32 %v1858_v59, %v1032_v13 }
 0x141   : > { %1626 = vcosq.f32 %v898_v36  ;;  %v980_v56 = vsub.s32 0, %v2791_v24  ;;  %v1036_v44 = vshrl.u32 %v1856_v55, %v1033_v41  ;;  %v1039_v48 = vshrl.u32 %v1857_v57, %v1033_v41 }
 0x142   : > { %1628 = vsinq.f32 %v898_v36  ;;  %v1042_v7 = vshrl.u32 %v1858_v59, %v1033_v41  ;;  %v1045_v42 = vshrl.u32 %v1859_v61, %v1033_v41  ;;  %v1047_v21 = vshll.u32 %v1859_v61, %v1032_v13 }
 0x143   : > { %v1452_v45 = vmin.u32 %v980_v56, %v2791_v24  ;;  %v1037_v63 = vor.u32 %v1036_v44, %v1035_v28  ;;  %v1040_v20 = vor.u32 %v1039_v48, %v1038_v25  ;;  %vm1050_vm13 = vcmp.lt.s32.totalorder %v1031_v54, 1 }
 0x144   : > { %v1034_v57 = vshrl.u32 %v1855_v53, %v1033_v41  ;;  %v1043_v12 = vor.u32 %v1042_v7, %v1041_v49  ;;  %v1046_v15 = vor.u32 %v1045_v42, %v1044_v32  ;;  %v1048_v59 = vshrl.u32 %v1860_v8, %v1033_v41 }
 0x145   : > { %v982_v55 = vclz %v1452_v45  ;;  %vm1052_vm15 = vcmp.lt.s32.totalorder %v1031_v54, 3  ;;  %vm1051_vm0 = vcmp.lt.s32.totalorder %v1031_v54, 2  ;;  %vm1053_vm3 = vcmp.lt.s32.totalorder %v1031_v54, 4 }
 0x146   : > { %v1058_v38 = vsel %vm1050_vm13, %v1037_v63, %v1040_v20  ;;  %v1049_v61 = vor.u32 %v1048_v59, %v1047_v21  ;;  %v1055_v2 = vsel %vm1053_vm3, %v1043_v12, 2102212464  ;;  %v1059_v39 = vsel %vm1053_vm3, %v1046_v15, 920167782 }
 0x147   : > { %v1453_v30 = vadd.s32 4294967294, %v982_v55  ;;  %v1054_v43 = vsel %vm1050_vm13, %v1034_v57, %v1037_v63  ;;  %v1060_v3 = vsel %vm1052_vm15, %v1043_v12, %v1059_v39  ;;  %v1062_v8 = vsel %vm1050_vm13, %v1040_v20, %v1043_v12 }
 0x148   : > { %v1056_v31 = vsel %vm1052_vm15, %v1040_v20, %v1055_v2  ;;  %v1061_v33 = vsel %vm1051_vm0, %v1058_v38, %v1060_v3  ;;  %v1063_v35 = vsel %vm1053_vm3, %v1049_v61, 1326507024  ;;  %v1000_v57 = vsub.s32 4, %v2780_v46 }
 0x149   : > { %vm1454_vm4 = vcmp.lt.s32.totalorder %v1453_v30, 0  ;;  %v2826_v4 = vmul.u32.u64.low %v1066_v62, %v1061_v33  ;;  %v2827_v11 = vmul.u32.u64.high %v1066_v62, %v1061_v33, %v2826_v4  ;;  %v1064_v41 = vsel %vm1052_vm15, %v1046_v15, %v1063_v35 }
 0x14a   : > { %v985_v22 = vsel %vm1454_vm4, 0, %v1453_v30  ;;  %v1057_v28 = vsel %vm1051_vm0, %v1054_v43, %v1056_v31  ;;  %v1065_v56 = vsel %vm1051_vm0, %v1062_v8, %v1064_v41  ;;  %vm915_vm7 = vcmp.le.f32.partialorder %v914_v51, 0.7853982  ;;  %v1641_v41 = vld [vmem:[#allocation8 + $0x8] sm:$0xff] }
 0x14b   : > { %v1627_v53 = vpop.eup %1626  ;;  %v986_v26 = vsub.s32 32, %v985_v22  ;;  %v987_v10 = vshll.u32 %v2791_v24, %v985_v22  ;;  %v990_v52 = vsub.s32 4294967266, %v985_v22  ;;  %v1073_v54 = vmul.u32 %v1066_v62, %v1057_v28  ;;  %v1642_v28 = vld [vmem:[#allocation8 + $0x10] sm:$0xff] }
 0x14c   : > { %v1629_v60 = vpop.eup %1628  ;;  %v910_v29 = vxor.u32 2147483648, %v1627_v53  ;;  %v2841_v45 = vmul.u32.u64.low %v1066_v62, %v1065_v56  ;;  %v2842_v0 = vmul.u32.u64.high %v1066_v62, %v1065_v56, %v2841_v45  ;;  %v1076_v42 = vadd.s32 1, %v2827_v11 }
 0x14d   : > { %v907_v14 = vxor.u32 2147483648, %v1629_v60  ;;  %v988_v13 = vshrl.u32 %v970_v58, %v986_v26  ;;  %v991_v50 = vadd.s32 127, %v990_v52  ;;  %v1001_v12 = vsel %vm916_vm6, %v1000_v57, %v2780_v46 }
 0x14e   : > { %v911_v47 = vsel %vm909_vm14, %v910_v29, %v1629_v60  ;;  %vm1075_vm5 = vc.u32 %v2842_v0, %v2826_v4  ;;  %v1003_v30 = vsel %vm915_vm7, 0, %v1001_v12  ;;  %v1074_v31 = vadd.s32 %v2826_v4, %v2842_v0 }
 0x14f   : > { %v908_v36 = vsel %vm906_vm10, %v1627_v53, %v907_v14  ;;  %v989_v49 = vor.u32 %v988_v13, %v987_v10  ;;  %v992_v44 = vshll.u32 %v991_v50, 23  ;;  %v1007_v2 = vadd.s32 3, %v1003_v30  ;;  %v1640_v50 = vld [vmem:[#allocation8] sm:$0xff] }
 0x150   : > { %v912_v24 = vsel %vm905_vm11, %v908_v36, %v911_v47  ;;  %vm1006_vm11 = vweird.f32 %v2623_v17  ;;  %vm1020_vm13 = vcmp.lt.s32.totalorder %v2726_v1, 0  ;;  %vm1019_vm14 = vcmp.le.f32.partialorder %v1018_v40, 0.7853982 }
 0x151   : > { %v913_v25 = vsel %vm902_vm12, nan, %v912_v24  ;;  %v993_v9 = vor.u32 4788187, %v992_v44  ;;  %v996_v32 = vcvt.s32.f32 %v989_v49  ;;  %v1008_v53 = vand.u32 3, %v1007_v2 }
 0x152   : > { %v1190_v48 = vrot.slane %v913_v25, %v2097_v34  ;;  %v1194_v7 = vrot.slane %v913_v25, %v2099_v37  ;;  %v1643_v25 = vld [vmem:[#allocation8 + $0x18] sm:$0xff]  ;;  %vm1110_vm4 = vweird.f32 %v2726_v1 }
 0x153   : > { %v994_v55 = vand.u32 2147483647, %v993_v9  ;;  %vm1013_vm8 = vcmp.eq.s32.totalorder %v1008_v53, 2  ;;  %vm1010_vm9 = vcmp.eq.s32.totalorder %v1008_v53, 0  ;;  %vm1009_vm10 = vcmp.lt.s32.totalorder %v1008_v53, 2 }
 0x154   : > { %v1247_v27 = vsel %vm2349_vm1, %v1190_v48, %v2400_v6  ;;  %v1248_v63 = vsel %vm2356_vm2, %v1194_v7, %v2409_v16  ;;  %v1249_v20 = vsel %vm2349_vm1, %v1190_v48, %v2411_v5  ;;  %v1250_v21 = vsel %vm2356_vm2, %v1194_v7, %v2413_v23 }
 0x155   : > { %1279 = vst [vmem:[%s2440_s21 + $0xa0] sm:$0xff] %v1247_v27  ;;  %1280 = vst [vmem:[%s2440_s21 + $0xa8] sm:$0xff] %v1248_v63  ;;  %v997_v6 = vmul.f32 %v996_v32, %v994_v55  ;;  %v1077_v16 = vsel %vm1075_vm5, %v1076_v42, %v2827_v11 }
 0x156   : > { %1281 = vst [vmem:[%s2440_s21 + $0xb0] sm:$0xff] %v1249_v20  ;;  %1282 = vst [vmem:[%s2440_s21 + $0xb8] sm:$0xff] %v1250_v21  ;;  %v1078_v5 = vadd.s32 %v1077_v16, %v1073_v54 }
 0x157   : > { %v998_v23 = vxor.u32 2147483648, %v997_v6 }
 0x158   : > { %v1079_v58 = vadd.s32 536870912, %v1078_v5 }
 0x159   : > { %v999_v15 = vsel %vm916_vm6, %v998_v23, %v997_v6 }
 0x15a   : > { %v1002_v59 = vsel %vm915_vm7, %v2623_v17, %v999_v15  ;;  %v1080_v38 = vshrl.u32 %v1079_v58, 30 }
 0x15b   : > { %1630 = vcosq.f32 %v1002_v59 }
 0x15c   : > { %1632 = vsinq.f32 %v1002_v59  ;;  %v1081_v61 = vshll.u32 %v1080_v38, 30  ;;  %v1104_v9 = vsub.s32 4, %v1080_v38 }
 0x15e   : > { %v1082_v39 = vsub.s32 %v1078_v5, %v1081_v61  ;;  %v1105_v42 = vsel %vm1020_vm13, %v1104_v9, %v1080_v38 }
 0x15f   : > { %v1107_v20 = vsel %vm1019_vm14, 0, %v1105_v42 }
 0x160   : > { %v1084_v62 = vsub.s32 0, %v1082_v39  ;;  %v1111_v21 = vadd.s32 3, %v1107_v20 }
 0x162   : > { %v1456_v43 = vmin.u32 %v1084_v62, %v1082_v39  ;;  %v1112_v55 = vand.u32 3, %v1111_v21 }
 0x164   : > { %v1086_v3 = vclz %v1456_v43  ;;  %vm1117_vm15 = vcmp.eq.s32.totalorder %v1112_v55, 2  ;;  %vm1114_vm0 = vcmp.eq.s32.totalorder %v1112_v55, 0  ;;  %vm1113_vm3 = vcmp.lt.s32.totalorder %v1112_v55, 2 }
 0x165   : > { %v1631_v8 = vpop.eup %1630 }
 0x166   : > { %v1633_v51 = vpop.eup %1632  ;;  %v1014_v46 = vxor.u32 2147483648, %v1631_v8  ;;  %v1457_v60 = vadd.s32 4294967294, %v1086_v3 }
 0x167   : > { %v1011_v29 = vxor.u32 2147483648, %v1633_v51 }
 0x168   : > { %v1015_v22 = vsel %vm1013_vm8, %v1014_v46, %v1633_v51  ;;  %vm1458_vm12 = vcmp.lt.s32.totalorder %v1457_v60, 0 }
 0x169   : > { %v1012_v33 = vsel %vm1010_vm9, %v1631_v8, %v1011_v29  ;;  %v1089_v14 = vsel %vm1458_vm12, 0, %v1457_v60 }
 0x16a   : > { %v1016_v26 = vsel %vm1009_vm10, %v1012_v33, %v1015_v22  ;;  %v1090_v10 = vsub.s32 32, %v1089_v14  ;;  %v1094_v52 = vsub.s32 4294967266, %v1089_v14  ;;  %v1091_v35 = vshll.u32 %v1082_v39, %v1089_v14 }
 0x16b   : > { %v1017_v47 = vsel %vm1006_vm11, nan, %v1016_v26 }
 0x16c   : > { %v1198_v11 = vrot.slane %v1017_v47, %v2097_v34  ;;  %v1202_v17 = vrot.slane %v1017_v47, %v2099_v37  ;;  %v1092_v36 = vshrl.u32 %v1074_v31, %v1090_v10  ;;  %v1095_v13 = vadd.s32 127, %v1094_v52 }
 0x16e   : > { %v1251_v4 = vsel %vm2349_vm1, %v1198_v11, %v1640_v50  ;;  %v1252_v24 = vsel %vm2356_vm2, %v1202_v17, %v1641_v41  ;;  %v1253_v56 = vsel %vm2349_vm1, %v1198_v11, %v1642_v28  ;;  %v1254_v49 = vsel %vm2356_vm2, %v1202_v17, %v1643_v25 }
 0x16f   : > { %1283 = vst [vmem:[%s2440_s21 + $0xc0] sm:$0xff] %v1251_v4  ;;  %1284 = vst [vmem:[%s2440_s21 + $0xc8] sm:$0xff] %v1252_v24  ;;  %v1093_v44 = vor.u32 %v1092_v36, %v1091_v35  ;;  %v1096_v48 = vshll.u32 %v1095_v13, 23 }
 0x170   : > { %1285 = vst [vmem:[%s2440_s21 + $0xd0] sm:$0xff] %v1253_v56  ;;  %1286 = vst [vmem:[%s2440_s21 + $0xd8] sm:$0xff] %v1254_v49 }
 0x171   : > { %v1097_v7 = vor.u32 4788187, %v1096_v48  ;;  %v1100_v45 = vcvt.s32.f32 %v1093_v44 }
 0x173   : > { %v1098_v0 = vand.u32 2147483647, %v1097_v7 }
 0x175   : > { %v1101_v32 = vmul.f32 %v1100_v45, %v1098_v0 }
 0x177   : > { %v1102_v54 = vxor.u32 2147483648, %v1101_v32 }
 0x179   : > { %v1103_v27 = vsel %vm1020_vm13, %v1102_v54, %v1101_v32 }
 0x17a   : > { %v1106_v63 = vsel %vm1019_vm14, %v2726_v1, %v1103_v27 }
 0x17b   : > { %1634 = vcosq.f32 %v1106_v63 }
 0x17c   : > { %1636 = vsinq.f32 %v1106_v63 }
 0x185   : > { %v1635_v57 = vpop.eup %1634 }
 0x186   : > { %v1637_v6 = vpop.eup %1636  ;;  %v1118_v16 = vxor.u32 2147483648, %v1635_v57 }
 0x187   : > { %v1115_v5 = vxor.u32 2147483648, %v1637_v6 }
 0x188   : > { %v1119_v40 = vsel %vm1117_vm15, %v1118_v16, %v1637_v6 }
 0x189   : > { %v1116_v23 = vsel %vm1114_vm0, %v1635_v57, %v1115_v5 }
 0x18a   : > { %v1120_v12 = vsel %vm1113_vm3, %v1116_v23, %v1119_v40 }
 0x18b   : > { %v1121_v58 = vsel %vm1110_vm4, nan, %v1120_v12 }
 0x18c   : > { %v1206_v15 = vrot.slane %v1121_v58, %v2097_v34  ;;  %v1210_v59 = vrot.slane %v1121_v58, %v2099_v37 }
 0x18e   : > { %v1255_v1 = vsel %vm2349_vm1, %v1206_v15, %v1640_v50  ;;  %v1256_v30 = vsel %vm2356_vm2, %v1210_v59, %v1641_v41  ;;  %v1257_v34 = vsel %vm2349_vm1, %v1206_v15, %v1642_v28  ;;  %v1258_v37 = vsel %vm2356_vm2, %v1210_v59, %v1643_v25 }
 0x18f   : > { %1287 = vst [vmem:[%s2440_s21 + $0xe0] sm:$0xff] %v1255_v1  ;;  %1288 = vst [vmem:[%s2440_s21 + $0xe8] sm:$0xff] %v1256_v30 }
 0x190   : > { %1289 = vst [vmem:[%s2440_s21 + $0xf0] sm:$0xff] %v1257_v34  ;;  %1290 = vst [vmem:[%s2440_s21 + $0xf8] sm:$0xff] %v1258_v37 }
 0x191   : > { %1769 = shalt.err (!%p1766_p5)
}
 0x192   : > { %s1770_s10 = scalar_lea.hbm %s2899_s14, 4096  ;;  %s1774_s8 = scalar_lea.hbm %s2967_s4, 8192 }
 0x193   : > { %p1771_p6 = scmp.ne.s32.totalorder %s2899_s14, %s1770_s10  ;;  %p1775_p12 = scmp.lt.u32.totalorder %s2899_s14, %s2967_s4 }
 0x194   : > { %p1776_p0 = scmp.lt.u32.totalorder %s1774_s8, %s1770_s10  ;;  %p1778_p13 = scmp.lt.u32.totalorder %s1770_s10, %s2899_s14 }
 0x195   : > { %p1772_p7 = pnand %p1771_p6, %p2998_p1 }
 0x196   : > { %p1777_p2 = por %p1776_p0, %p1775_p12 }
 0x197   : > { %p1773_p9 = pneg %p1772_p7 }
 0x198   : > { %p1779_p4 = por %p1778_p13, %p1777_p2 }
 0x19a   : > { %p1780_p8 = pnand %p1779_p4, %p1773_p9 }
 0x19c   : > { %1783 = shalt.err (!%p1780_p8)
}
 0x19d   : > { %s1862_s7 = smov 256   ;;  %s1863_s21 = smov 16  }
 0x19e   : > { %1515 = dma.vmem_to_hbm [thread:$0]  (%p2998_p1), %s2901_s1, 4096, %s2899_s14, %s2917_s18, %s1862_s7, %s1862_s7, %s1863_s21  }
 0x19f PF: > { %p1542_p10 = scmp.ge.s32.totalorder %s1846_s20, 2  ;;  %s1324_s12 = sand.u32 1, %s1826_s15  }
 0x1a0   : > { %p2999_p11 = scmp.ne.s32.totalorder %s2974_s27, 0  ;;  %s1325_s11 = scalar_lea.sflag [#allocation4], %s1324_s12 }
 0x1a2   : > { %p1531_p3 = pnand %p1542_p10, %p2999_p11 }
 0x1a4   : > { %1821 = dma.done.wait (!%p1531_p3), %s1325_s11, 4096  }
 0x1a5   : > { %1823 = vsyncadd (!%p1531_p3), %s1325_s11, 4294963200  ;;  %s20_s20 = sadd.s32 1, %s1846_s20   ;;  %s3000_s15 = smov %s1830_s16 }
 0x1a6   : > { %p17_p5 = scmp.ge.s32.totalorder %s20_s20, 4   ;;  %s3001_s16 = smov %s1834_s17 }
 0x1a7   : > { %s3002_s17 = smov %s1942_s28  ;;  %s3003_s18 = smov %s1842_s19 }
 0x1a8   : > { %s3004_s19 = smov %s3006_s23  ;;  %19 = sbr.rel (!%p17_p5) target bundleno = 9 (0x9), region = 86 }
 0x1af   :  { %1330 = vsyncpa [#allocation3], 1 }
 0x1b0   :  { %1332 = vsyncpa [#allocation3 + $0x1], 1 }
 0x1b1   :  { %1333 = vsyncpa [#allocation6], 1 }
 0x1b2   :  { %1334 = vsyncpa [#allocation9], 1 }
 0x1b3   :  { %1335 = vsyncpa [#allocation4], 1 }
 0x1b4   :  { %1337 = vsyncpa [#allocation4 + $0x1], 1 }

</bundles_post_ra>
